<compile_context>
chip_gen: v6e
topology: v6e:2x2x1
jax: 0.10.0
libtpu: 0.0.40
codegen_flags: <defaults>
</compile_context>

<pallas_src>
import jax
import jax.numpy as jnp
import numpy as np
from jax import lax
from jax.experimental import pallas as pl
from jax.experimental.pallas import tpu as pltpu


def _bf16(v):
    return v.astype(jnp.bfloat16)


def _glore_fused_kernel(x_ref, wt_ref, wp_ref, wn_ref, wc_ref, w2_ref,
                        o_ref, y_scr, z_scr):
    """Per-batch fused GloRe: projections, graph convs, conv_2 + residual."""
    C, L = x_ref.shape[1], x_ref.shape[2]
    S = wp_ref.shape[0]
    G = L // S                         # row stride of the raw .view() scramble

    x = x_ref[0]                       # (C, L) f32, kept for the residual add
    xb = _bf16(x)                      # bf16 copy feeds the MXU

    # theta / phi projections (1x1 convs == matmuls), f32 accumulation.
    B = lax.dot_general(wt_ref[...], xb, (((1,), (0,)), ((), ())),
                        preferred_element_type=jnp.float32)        # (N, L)
    P = lax.dot_general(wp_ref[...], xb, (((1,), (0,)), ((), ())),
                        preferred_element_type=jnp.float32)        # (S, L)
    Bb = _bf16(B)                      # B is reused in two matmuls

    # V = (B @ phi^T) / L  -> (N, S)
    V = lax.dot_general(Bb, _bf16(P), (((1,), (1,)), ((), ())),
                        preferred_element_type=jnp.float32) * (1.0 / L)
    # node_conv (1x1 Conv1d over N) + ReLU: (N, N) @ (N, S) -> (N, S)
    V = jnp.maximum(
        lax.dot_general(wn_ref[...], _bf16(V), (((1,), (0,)), ((), ())),
                        preferred_element_type=jnp.float32), 0.0)
    # channel_conv on V^T + ReLU: (S, S) @ (S, N) -> (S, N)
    V = jnp.maximum(
        lax.dot_general(wc_ref[...], _bf16(V), (((1,), (1,)), ((), ())),
                        preferred_element_type=jnp.float32), 0.0)

    # Y = B^T @ V^T -> (L, S); park in VMEM scratch.
    Y = lax.dot_general(Bb, _bf16(V), (((0,), (1,)), ((), ())),
                        preferred_element_type=jnp.float32)
    y_scr[...] = Y

    # PyTorch's y.view(b, S, H, W) is a raw row-major reinterpretation of the
    # contiguous (L, S) bmm result (NOT a transpose).  With G = L // S, the
    # strided row gather Y[a::G, :] is exactly the lane block [a*S:(a+1)*S] of
    # the reinterpreted (S, L) matrix.  Static unrolled loop; G stays small at
    # production shapes (S ~ C/2 grows with C).
    for a in range(G):
        z_scr[:, a * S:(a + 1) * S] = y_scr[pl.ds(a, S, stride=G), :]

    # conv_2 (1x1, S -> C) + residual; single lane-dense (C, L) store.
    y2 = lax.dot_general(w2_ref[...], _bf16(z_scr[...]),
                         (((1,), (0,)), ((), ())),
                         preferred_element_type=jnp.float32)        # (C, L)
    o_ref[0] = (x + y2).astype(o_ref.dtype)


@jax.jit
def glore_forward(x, wt, wp, wn, wc, w2):
    b, C, H, W = x.shape
    N, S, L = C // 4, C // 2, H * W
    if L % S != 0:
        # TODO(synk): general (H*W) % (C//2) != 0 case needs the two-pass
        # (HBM-intermediate) variant of the raw .view() scramble.
        raise NotImplementedError("fused GloRe kernel requires (H*W) % (C//2) == 0")
    x_flat = x.reshape(b, C, L)

    # Weights feed the MXU in bf16 (f32 accumulation happens in-kernel).
    wt, wp, wn, wc, w2 = (w.astype(jnp.bfloat16) for w in (wt, wp, wn, wc, w2))

    # Size the scoped-VMEM limit to the actual per-step working set instead of
    # relying on the 16/32 MiB defaults.
    step_bytes = (
        2 * 2 * C * L * 4                                     # x + out blocks, double-buffered
        + 2 * 2 * (N * C + S * C + N * N + S * S + C * S)     # bf16 weights, double-buffered
        + 2 * L * S * 4                                       # y/z VMEM scratch
        + 4 * (N + S) * L                                     # live B/P f32 values
    )
    vmem_limit = int(min(100 * 1024 * 1024, max(32 * 1024 * 1024, 2 * step_bytes)))

    out = pl.pallas_call(
        _glore_fused_kernel,
        out_shape=jax.ShapeDtypeStruct((b, C, L), x.dtype),
        grid=(b,),
        in_specs=[
            pl.BlockSpec((1, C, L), lambda i: (i, 0, 0)),
            pl.BlockSpec((N, C), lambda i: (0, 0)),
            pl.BlockSpec((S, C), lambda i: (0, 0)),
            pl.BlockSpec((N, N), lambda i: (0, 0)),
            pl.BlockSpec((S, S), lambda i: (0, 0)),
            pl.BlockSpec((C, S), lambda i: (0, 0)),
        ],
        out_specs=pl.BlockSpec((1, C, L), lambda i: (i, 0, 0)),
        scratch_shapes=[
            pltpu.VMEM((L, S), jnp.float32),   # Y as produced by the bmm
            pltpu.VMEM((S, L), jnp.float32),   # raw-view reinterpretation of Y
        ],
        compiler_params=pltpu.CompilerParams(
            dimension_semantics=("parallel",),
            vmem_limit_bytes=vmem_limit),
    )(x_flat, wt, wp, wn, wc, w2)

    return out.reshape(b, C, H, W)


def glore_reference(x, wt, wp, wn, wc, w2):
    """Pure-JAX f32 reference mirroring the PyTorch forward exactly."""
    b, C, H, W = x.shape
    N, S, L = C // 4, C // 2, H * W
    xf = x.reshape(b, C, L)
    B = jnp.einsum('nc,bcl->bnl', wt, xf)
    P = jnp.einsum('sc,bcl->bsl', wp, xf)
    V = jnp.einsum('bnl,bsl->bns', B, P) / L
    V = jax.nn.relu(jnp.einsum('mn,bns->bms', wn, V))
    V = jax.nn.relu(jnp.einsum('ts,bns->btn', wc, V))          # (b, S, N)
    Y = jnp.einsum('bnl,bsn->bls', B, V)                        # (b, L, S)
    Y = Y.reshape(b, S, L)                                      # raw .view()
    y = jnp.einsum('cs,bsl->bcl', w2, Y)
    return (xf + y).reshape(b, C, H, W)


if __name__ == "__main__":
    # Small shapes consistent with the module: in_channels divisible by 4.
    batch, C, H, W = 2, 16, 16, 16
    N, S = C // 4, C // 2

    key = jax.random.PRNGKey(0)
    kx, k1, k2, k3, k4, k5 = jax.random.split(key, 6)

    x = jax.random.normal(kx, (batch, C, H, W), dtype=jnp.float32)
    # Conv weights (1x1 kernels) stored as 2-D (out_channels, in_channels).
    wt = jax.random.normal(k1, (N, C), dtype=jnp.float32) * 0.1   # theta
    wp = jax.random.normal(k2, (S, C), dtype=jnp.float32) * 0.1   # phi
    wn = jax.random.normal(k3, (N, N), dtype=jnp.float32) * 0.1   # node_conv
    wc = jax.random.normal(k4, (S, S), dtype=jnp.float32) * 0.1   # channel_conv
    w2 = jax.random.normal(k5, (C, S), dtype=jnp.float32) * 0.1   # conv_2

    out = glore_forward(x, wt, wp, wn, wc, w2)
    out = jax.block_until_ready(out)

    ref = glore_reference(x, wt, wp, wn, wc, w2)
    # bf16 MXU inputs (f32 accumulation) vs. the pure-f32 reference -> looser
    # tolerance than the all-f32 version; the residual path stays f32 so the
    # deviation is confined to the small graph-reasoning branch.
    np.testing.assert_allclose(np.asarray(out), np.asarray(ref),
                               rtol=1e-2, atol=1e-2)
    print("KERNEL_OK")
</pallas_src>

<mosaic_0001>
module attributes {stable_mosaic.version = 11 : i64} {
  func.func @_glore_fused_kernel(%arg0: i32, %arg1: memref<1x16x256xf32, #tpu.memory_space<vmem>>, %arg2: memref<4x16xbf16, #tpu.memory_space<vmem>>, %arg3: memref<8x16xbf16, #tpu.memory_space<vmem>>, %arg4: memref<4x4xbf16, #tpu.memory_space<vmem>>, %arg5: memref<8x8xbf16, #tpu.memory_space<vmem>>, %arg6: memref<16x8xbf16, #tpu.memory_space<vmem>>, %arg7: memref<1x16x256xf32, #tpu.memory_space<vmem>>, %arg8: memref<256x8xf32, #tpu.memory_space<vmem>>, %arg9: memref<8x256xf32, #tpu.memory_space<vmem>>) attributes {dimension_semantics = [#tpu.dimension_semantics<parallel>], iteration_bounds = array<i64: 2>, scalar_prefetch = 0 : i64, scratch_operands = 2 : i64, tpu.core_type = #tpu.core_type<tc>, window_params = [{transform_indices = @transform_0, window_bounds = array<i64: 1, 16, 256>}, {pipeline_mode = #tpu.pipeline_mode<synchronous>, transform_indices = @transform_1, window_bounds = array<i64: 4, 16>}, {pipeline_mode = #tpu.pipeline_mode<synchronous>, transform_indices = @transform_2, window_bounds = array<i64: 8, 16>}, {pipeline_mode = #tpu.pipeline_mode<synchronous>, transform_indices = @transform_3, window_bounds = array<i64: 4, 4>}, {pipeline_mode = #tpu.pipeline_mode<synchronous>, transform_indices = @transform_4, window_bounds = array<i64: 8, 8>}, {pipeline_mode = #tpu.pipeline_mode<synchronous>, transform_indices = @transform_5, window_bounds = array<i64: 16, 8>}, {transform_indices = @transform_6, window_bounds = array<i64: 1, 16, 256>}]} {
    %c0 = arith.constant 0 : index
    %c0_0 = arith.constant 0 : index
    %c0_1 = arith.constant 0 : index
    %0 = vector.load %arg1[%c0, %c0_0, %c0_1] : memref<1x16x256xf32, #tpu.memory_space<vmem>>, vector<1x16x256xf32>
    %1 = vector.shape_cast %0 : vector<1x16x256xf32> to vector<16x256xf32>
    %2 = arith.truncf %1 : vector<16x256xf32> to vector<16x256xbf16>
    %c0_2 = arith.constant 0 : index
    %c0_3 = arith.constant 0 : index
    %3 = vector.load %arg2[%c0_2, %c0_3] : memref<4x16xbf16, #tpu.memory_space<vmem>>, vector<4x16xbf16>
    %cst = arith.constant dense<0.000000e+00> : vector<4x256xf32>
    %4 = tpu.matmul %3, %2, %cst {dimension_numbers = #tpu.dot_dimension_numbers<[1], [0], [0], [1], [0, 0, 1, 1], [], []>} : vector<4x16xbf16>, vector<16x256xbf16>, vector<4x256xf32> -> vector<4x256xf32>
    %c0_4 = arith.constant 0 : index
    %c0_5 = arith.constant 0 : index
    %5 = vector.load %arg3[%c0_4, %c0_5] : memref<8x16xbf16, #tpu.memory_space<vmem>>, vector<8x16xbf16>
    %cst_6 = arith.constant dense<0.000000e+00> : vector<8x256xf32>
    %6 = tpu.matmul %5, %2, %cst_6 {dimension_numbers = #tpu.dot_dimension_numbers<[1], [0], [0], [1], [0, 0, 1, 1], [], []>} : vector<8x16xbf16>, vector<16x256xbf16>, vector<8x256xf32> -> vector<8x256xf32>
    %7 = arith.truncf %4 : vector<4x256xf32> to vector<4x256xbf16>
    %8 = arith.truncf %6 : vector<8x256xf32> to vector<8x256xbf16>
    %cst_7 = arith.constant dense<0.000000e+00> : vector<4x8xf32>
    %9 = tpu.matmul %7, %8, %cst_7 {dimension_numbers = #tpu.dot_dimension_numbers<[1], [1], [0], [0], [0, 0, 1, 0], [], []>} : vector<4x256xbf16>, vector<8x256xbf16>, vector<4x8xf32> -> vector<4x8xf32>
    %cst_8 = arith.constant 3.906250e-03 : f32
    %10 = vector.broadcast %cst_8 : f32 to vector<4x8xf32>
    %11 = arith.mulf %9, %10 : vector<4x8xf32>
    %c0_9 = arith.constant 0 : index
    %c0_10 = arith.constant 0 : index
    %12 = vector.load %arg4[%c0_9, %c0_10] : memref<4x4xbf16, #tpu.memory_space<vmem>>, vector<4x4xbf16>
    %13 = arith.truncf %11 : vector<4x8xf32> to vector<4x8xbf16>
    %cst_11 = arith.constant dense<0.000000e+00> : vector<4x8xf32>
    %14 = tpu.matmul %12, %13, %cst_11 {dimension_numbers = #tpu.dot_dimension_numbers<[1], [0], [0], [1], [0, 0, 1, 1], [], []>} : vector<4x4xbf16>, vector<4x8xbf16>, vector<4x8xf32> -> vector<4x8xf32>
    %cst_12 = arith.constant 0.000000e+00 : f32
    %15 = vector.broadcast %cst_12 : f32 to vector<4x8xf32>
    %16 = arith.maximumf %14, %15 : vector<4x8xf32>
    %c0_13 = arith.constant 0 : index
    %c0_14 = arith.constant 0 : index
    %17 = vector.load %arg5[%c0_13, %c0_14] : memref<8x8xbf16, #tpu.memory_space<vmem>>, vector<8x8xbf16>
    %18 = arith.truncf %16 : vector<4x8xf32> to vector<4x8xbf16>
    %cst_15 = arith.constant dense<0.000000e+00> : vector<8x4xf32>
    %19 = tpu.matmul %17, %18, %cst_15 {dimension_numbers = #tpu.dot_dimension_numbers<[1], [1], [0], [0], [0, 0, 1, 0], [], []>} : vector<8x8xbf16>, vector<4x8xbf16>, vector<8x4xf32> -> vector<8x4xf32>
    %cst_16 = arith.constant 0.000000e+00 : f32
    %20 = vector.broadcast %cst_16 : f32 to vector<8x4xf32>
    %21 = arith.maximumf %19, %20 : vector<8x4xf32>
    %22 = arith.truncf %21 : vector<8x4xf32> to vector<8x4xbf16>
    %cst_17 = arith.constant dense<0.000000e+00> : vector<256x8xf32>
    %23 = tpu.matmul %7, %22, %cst_17 {dimension_numbers = #tpu.dot_dimension_numbers<[0], [1], [1], [0], [0, 1, 1, 0], [], []>} : vector<4x256xbf16>, vector<8x4xbf16>, vector<256x8xf32> -> vector<256x8xf32>
    %c0_18 = arith.constant 0 : index
    %c0_19 = arith.constant 0 : index
    %24 = vector.load %arg8[%c0_18, %c0_19] : memref<256x8xf32, #tpu.memory_space<vmem>>, vector<256x8xf32>
    tpu.vector_store %arg8[%c0_18, %c0_19], %23 {strides = array<i32>} : memref<256x8xf32, #tpu.memory_space<vmem>>, vector<256x8xf32>,
    %c0_20 = arith.constant 0 : index
    %c0_21 = arith.constant 0 : index
    %25 = tpu.strided_load %arg8[%c0_20, %c0_21] {strides = array<i32: 32, 1>} : memref<256x8xf32, #tpu.memory_space<vmem>>, vector<8x8xf32>
    %c0_22 = arith.constant 0 : index
    %c0_23 = arith.constant 0 : index
    %26 = vector.load %arg9[%c0_22, %c0_23] : memref<8x256xf32, #tpu.memory_space<vmem>>, vector<8x8xf32>
    tpu.vector_store %arg9[%c0_22, %c0_23], %25 {strides = array<i32>} : memref<8x256xf32, #tpu.memory_space<vmem>>, vector<8x8xf32>,
    %c1 = arith.constant 1 : index
    %c0_24 = arith.constant 0 : index
    %27 = tpu.strided_load %arg8[%c1, %c0_24] {strides = array<i32: 32, 1>} : memref<256x8xf32, #tpu.memory_space<vmem>>, vector<8x8xf32>
    %c0_25 = arith.constant 0 : index
    %c8 = arith.constant 8 : index
    %28 = vector.load %arg9[%c0_25, %c8] : memref<8x256xf32, #tpu.memory_space<vmem>>, vector<8x8xf32>
    tpu.vector_store %arg9[%c0_25, %c8], %27 {strides = array<i32>} : memref<8x256xf32, #tpu.memory_space<vmem>>, vector<8x8xf32>,
    %c2 = arith.constant 2 : index
    %c0_26 = arith.constant 0 : index
    %29 = tpu.strided_load %arg8[%c2, %c0_26] {strides = array<i32: 32, 1>} : memref<256x8xf32, #tpu.memory_space<vmem>>, vector<8x8xf32>
    %c0_27 = arith.constant 0 : index
    %c16 = arith.constant 16 : index
    %30 = vector.load %arg9[%c0_27, %c16] : memref<8x256xf32, #tpu.memory_space<vmem>>, vector<8x8xf32>
    tpu.vector_store %arg9[%c0_27, %c16], %29 {strides = array<i32>} : memref<8x256xf32, #tpu.memory_space<vmem>>, vector<8x8xf32>,
    %c3 = arith.constant 3 : index
    %c0_28 = arith.constant 0 : index
    %31 = tpu.strided_load %arg8[%c3, %c0_28] {strides = array<i32: 32, 1>} : memref<256x8xf32, #tpu.memory_space<vmem>>, vector<8x8xf32>
    %c0_29 = arith.constant 0 : index
    %c24 = arith.constant 24 : index
    %32 = vector.load %arg9[%c0_29, %c24] : memref<8x256xf32, #tpu.memory_space<vmem>>, vector<8x8xf32>
    tpu.vector_store %arg9[%c0_29, %c24], %31 {strides = array<i32>} : memref<8x256xf32, #tpu.memory_space<vmem>>, vector<8x8xf32>,
    %c4 = arith.constant 4 : index
    %c0_30 = arith.constant 0 : index
    %33 = tpu.strided_load %arg8[%c4, %c0_30] {strides = array<i32: 32, 1>} : memref<256x8xf32, #tpu.memory_space<vmem>>, vector<8x8xf32>
    %c0_31 = arith.constant 0 : index
    %c32 = arith.constant 32 : index
    %34 = vector.load %arg9[%c0_31, %c32] : memref<8x256xf32, #tpu.memory_space<vmem>>, vector<8x8xf32>
    tpu.vector_store %arg9[%c0_31, %c32], %33 {strides = array<i32>} : memref<8x256xf32, #tpu.memory_space<vmem>>, vector<8x8xf32>,
    %c5 = arith.constant 5 : index
    %c0_32 = arith.constant 0 : index
    %35 = tpu.strided_load %arg8[%c5, %c0_32] {strides = array<i32: 32, 1>} : memref<256x8xf32, #tpu.memory_space<vmem>>, vector<8x8xf32>
    %c0_33 = arith.constant 0 : index
    %c40 = arith.constant 40 : index
    %36 = vector.load %arg9[%c0_33, %c40] : memref<8x256xf32, #tpu.memory_space<vmem>>, vector<8x8xf32>
    tpu.vector_store %arg9[%c0_33, %c40], %35 {strides = array<i32>} : memref<8x256xf32, #tpu.memory_space<vmem>>, vector<8x8xf32>,
    %c6 = arith.constant 6 : index
    %c0_34 = arith.constant 0 : index
    %37 = tpu.strided_load %arg8[%c6, %c0_34] {strides = array<i32: 32, 1>} : memref<256x8xf32, #tpu.memory_space<vmem>>, vector<8x8xf32>
    %c0_35 = arith.constant 0 : index
    %c48 = arith.constant 48 : index
    %38 = vector.load %arg9[%c0_35, %c48] : memref<8x256xf32, #tpu.memory_space<vmem>>, vector<8x8xf32>
    tpu.vector_store %arg9[%c0_35, %c48], %37 {strides = array<i32>} : memref<8x256xf32, #tpu.memory_space<vmem>>, vector<8x8xf32>,
    %c7 = arith.constant 7 : index
    %c0_36 = arith.constant 0 : index
    %39 = tpu.strided_load %arg8[%c7, %c0_36] {strides = array<i32: 32, 1>} : memref<256x8xf32, #tpu.memory_space<vmem>>, vector<8x8xf32>
    %c0_37 = arith.constant 0 : index
    %c56 = arith.constant 56 : index
    %40 = vector.load %arg9[%c0_37, %c56] : memref<8x256xf32, #tpu.memory_space<vmem>>, vector<8x8xf32>
    tpu.vector_store %arg9[%c0_37, %c56], %39 {strides = array<i32>} : memref<8x256xf32, #tpu.memory_space<vmem>>, vector<8x8xf32>,
    %c8_38 = arith.constant 8 : index
    %c0_39 = arith.constant 0 : index
    %41 = tpu.strided_load %arg8[%c8_38, %c0_39] {strides = array<i32: 32, 1>} : memref<256x8xf32, #tpu.memory_space<vmem>>, vector<8x8xf32>
    %c0_40 = arith.constant 0 : index
    %c64 = arith.constant 64 : index
    %42 = vector.load %arg9[%c0_40, %c64] : memref<8x256xf32, #tpu.memory_space<vmem>>, vector<8x8xf32>
    tpu.vector_store %arg9[%c0_40, %c64], %41 {strides = array<i32>} : memref<8x256xf32, #tpu.memory_space<vmem>>, vector<8x8xf32>,
    %c9 = arith.constant 9 : index
    %c0_41 = arith.constant 0 : index
    %43 = tpu.strided_load %arg8[%c9, %c0_41] {strides = array<i32: 32, 1>} : memref<256x8xf32, #tpu.memory_space<vmem>>, vector<8x8xf32>
    %c0_42 = arith.constant 0 : index
    %c72 = arith.constant 72 : index
    %44 = vector.load %arg9[%c0_42, %c72] : memref<8x256xf32, #tpu.memory_space<vmem>>, vector<8x8xf32>
    tpu.vector_store %arg9[%c0_42, %c72], %43 {strides = array<i32>} : memref<8x256xf32, #tpu.memory_space<vmem>>, vector<8x8xf32>,
    %c10 = arith.constant 10 : index
    %c0_43 = arith.constant 0 : index
    %45 = tpu.strided_load %arg8[%c10, %c0_43] {strides = array<i32: 32, 1>} : memref<256x8xf32, #tpu.memory_space<vmem>>, vector<8x8xf32>
    %c0_44 = arith.constant 0 : index
    %c80 = arith.constant 80 : index
    %46 = vector.load %arg9[%c0_44, %c80] : memref<8x256xf32, #tpu.memory_space<vmem>>, vector<8x8xf32>
    tpu.vector_store %arg9[%c0_44, %c80], %45 {strides = array<i32>} : memref<8x256xf32, #tpu.memory_space<vmem>>, vector<8x8xf32>,
    %c11 = arith.constant 11 : index
    %c0_45 = arith.constant 0 : index
    %47 = tpu.strided_load %arg8[%c11, %c0_45] {strides = array<i32: 32, 1>} : memref<256x8xf32, #tpu.memory_space<vmem>>, vector<8x8xf32>
    %c0_46 = arith.constant 0 : index
    %c88 = arith.constant 88 : index
    %48 = vector.load %arg9[%c0_46, %c88] : memref<8x256xf32, #tpu.memory_space<vmem>>, vector<8x8xf32>
    tpu.vector_store %arg9[%c0_46, %c88], %47 {strides = array<i32>} : memref<8x256xf32, #tpu.memory_space<vmem>>, vector<8x8xf32>,
    %c12 = arith.constant 12 : index
    %c0_47 = arith.constant 0 : index
    %49 = tpu.strided_load %arg8[%c12, %c0_47] {strides = array<i32: 32, 1>} : memref<256x8xf32, #tpu.memory_space<vmem>>, vector<8x8xf32>
    %c0_48 = arith.constant 0 : index
    %c96 = arith.constant 96 : index
    %50 = vector.load %arg9[%c0_48, %c96] : memref<8x256xf32, #tpu.memory_space<vmem>>, vector<8x8xf32>
    tpu.vector_store %arg9[%c0_48, %c96], %49 {strides = array<i32>} : memref<8x256xf32, #tpu.memory_space<vmem>>, vector<8x8xf32>,
    %c13 = arith.constant 13 : index
    %c0_49 = arith.constant 0 : index
    %51 = tpu.strided_load %arg8[%c13, %c0_49] {strides = array<i32: 32, 1>} : memref<256x8xf32, #tpu.memory_space<vmem>>, vector<8x8xf32>
    %c0_50 = arith.constant 0 : index
    %c104 = arith.constant 104 : index
    %52 = vector.load %arg9[%c0_50, %c104] : memref<8x256xf32, #tpu.memory_space<vmem>>, vector<8x8xf32>
    tpu.vector_store %arg9[%c0_50, %c104], %51 {strides = array<i32>} : memref<8x256xf32, #tpu.memory_space<vmem>>, vector<8x8xf32>,
    %c14 = arith.constant 14 : index
    %c0_51 = arith.constant 0 : index
    %53 = tpu.strided_load %arg8[%c14, %c0_51] {strides = array<i32: 32, 1>} : memref<256x8xf32, #tpu.memory_space<vmem>>, vector<8x8xf32>
    %c0_52 = arith.constant 0 : index
    %c112 = arith.constant 112 : index
    %54 = vector.load %arg9[%c0_52, %c112] : memref<8x256xf32, #tpu.memory_space<vmem>>, vector<8x8xf32>
    tpu.vector_store %arg9[%c0_52, %c112], %53 {strides = array<i32>} : memref<8x256xf32, #tpu.memory_space<vmem>>, vector<8x8xf32>,
    %c15 = arith.constant 15 : index
    %c0_53 = arith.constant 0 : index
    %55 = tpu.strided_load %arg8[%c15, %c0_53] {strides = array<i32: 32, 1>} : memref<256x8xf32, #tpu.memory_space<vmem>>, vector<8x8xf32>
    %c0_54 = arith.constant 0 : index
    %c120 = arith.constant 120 : index
    %56 = vector.load %arg9[%c0_54, %c120] : memref<8x256xf32, #tpu.memory_space<vmem>>, vector<8x8xf32>
    tpu.vector_store %arg9[%c0_54, %c120], %55 {strides = array<i32>} : memref<8x256xf32, #tpu.memory_space<vmem>>, vector<8x8xf32>,
    %c16_55 = arith.constant 16 : index
    %c0_56 = arith.constant 0 : index
    %57 = tpu.strided_load %arg8[%c16_55, %c0_56] {strides = array<i32: 32, 1>} : memref<256x8xf32, #tpu.memory_space<vmem>>, vector<8x8xf32>
    %c0_57 = arith.constant 0 : index
    %c128 = arith.constant 128 : index
    %58 = vector.load %arg9[%c0_57, %c128] : memref<8x256xf32, #tpu.memory_space<vmem>>, vector<8x8xf32>
    tpu.vector_store %arg9[%c0_57, %c128], %57 {strides = array<i32>} : memref<8x256xf32, #tpu.memory_space<vmem>>, vector<8x8xf32>,
    %c17 = arith.constant 17 : index
    %c0_58 = arith.constant 0 : index
    %59 = tpu.strided_load %arg8[%c17, %c0_58] {strides = array<i32: 32, 1>} : memref<256x8xf32, #tpu.memory_space<vmem>>, vector<8x8xf32>
    %c0_59 = arith.constant 0 : index
    %c136 = arith.constant 136 : index
    %60 = vector.load %arg9[%c0_59, %c136] : memref<8x256xf32, #tpu.memory_space<vmem>>, vector<8x8xf32>
    tpu.vector_store %arg9[%c0_59, %c136], %59 {strides = array<i32>} : memref<8x256xf32, #tpu.memory_space<vmem>>, vector<8x8xf32>,
    %c18 = arith.constant 18 : index
    %c0_60 = arith.constant 0 : index
    %61 = tpu.strided_load %arg8[%c18, %c0_60] {strides = array<i32: 32, 1>} : memref<256x8xf32, #tpu.memory_space<vmem>>, vector<8x8xf32>
    %c0_61 = arith.constant 0 : index
    %c144 = arith.constant 144 : index
    %62 = vector.load %arg9[%c0_61, %c144] : memref<8x256xf32, #tpu.memory_space<vmem>>, vector<8x8xf32>
    tpu.vector_store %arg9[%c0_61, %c144], %61 {strides = array<i32>} : memref<8x256xf32, #tpu.memory_space<vmem>>, vector<8x8xf32>,
    %c19 = arith.constant 19 : index
    %c0_62 = arith.constant 0 : index
    %63 = tpu.strided_load %arg8[%c19, %c0_62] {strides = array<i32: 32, 1>} : memref<256x8xf32, #tpu.memory_space<vmem>>, vector<8x8xf32>
    %c0_63 = arith.constant 0 : index
    %c152 = arith.constant 152 : index
    %64 = vector.load %arg9[%c0_63, %c152] : memref<8x256xf32, #tpu.memory_space<vmem>>, vector<8x8xf32>
    tpu.vector_store %arg9[%c0_63, %c152], %63 {strides = array<i32>} : memref<8x256xf32, #tpu.memory_space<vmem>>, vector<8x8xf32>,
    %c20 = arith.constant 20 : index
    %c0_64 = arith.constant 0 : index
    %65 = tpu.strided_load %arg8[%c20, %c0_64] {strides = array<i32: 32, 1>} : memref<256x8xf32, #tpu.memory_space<vmem>>, vector<8x8xf32>
    %c0_65 = arith.constant 0 : index
    %c160 = arith.constant 160 : index
    %66 = vector.load %arg9[%c0_65, %c160] : memref<8x256xf32, #tpu.memory_space<vmem>>, vector<8x8xf32>
    tpu.vector_store %arg9[%c0_65, %c160], %65 {strides = array<i32>} : memref<8x256xf32, #tpu.memory_space<vmem>>, vector<8x8xf32>,
    %c21 = arith.constant 21 : index
    %c0_66 = arith.constant 0 : index
    %67 = tpu.strided_load %arg8[%c21, %c0_66] {strides = array<i32: 32, 1>} : memref<256x8xf32, #tpu.memory_space<vmem>>, vector<8x8xf32>
    %c0_67 = arith.constant 0 : index
    %c168 = arith.constant 168 : index
    %68 = vector.load %arg9[%c0_67, %c168] : memref<8x256xf32, #tpu.memory_space<vmem>>, vector<8x8xf32>
    tpu.vector_store %arg9[%c0_67, %c168], %67 {strides = array<i32>} : memref<8x256xf32, #tpu.memory_space<vmem>>, vector<8x8xf32>,
    %c22 = arith.constant 22 : index
    %c0_68 = arith.constant 0 : index
    %69 = tpu.strided_load %arg8[%c22, %c0_68] {strides = array<i32: 32, 1>} : memref<256x8xf32, #tpu.memory_space<vmem>>, vector<8x8xf32>
    %c0_69 = arith.constant 0 : index
    %c176 = arith.constant 176 : index
    %70 = vector.load %arg9[%c0_69, %c176] : memref<8x256xf32, #tpu.memory_space<vmem>>, vector<8x8xf32>
    tpu.vector_store %arg9[%c0_69, %c176], %69 {strides = array<i32>} : memref<8x256xf32, #tpu.memory_space<vmem>>, vector<8x8xf32>,
    %c23 = arith.constant 23 : index
    %c0_70 = arith.constant 0 : index
    %71 = tpu.strided_load %arg8[%c23, %c0_70] {strides = array<i32: 32, 1>} : memref<256x8xf32, #tpu.memory_space<vmem>>, vector<8x8xf32>
    %c0_71 = arith.constant 0 : index
    %c184 = arith.constant 184 : index
    %72 = vector.load %arg9[%c0_71, %c184] : memref<8x256xf32, #tpu.memory_space<vmem>>, vector<8x8xf32>
    tpu.vector_store %arg9[%c0_71, %c184], %71 {strides = array<i32>} : memref<8x256xf32, #tpu.memory_space<vmem>>, vector<8x8xf32>,
    %c24_72 = arith.constant 24 : index
    %c0_73 = arith.constant 0 : index
    %73 = tpu.strided_load %arg8[%c24_72, %c0_73] {strides = array<i32: 32, 1>} : memref<256x8xf32, #tpu.memory_space<vmem>>, vector<8x8xf32>
    %c0_74 = arith.constant 0 : index
    %c192 = arith.constant 192 : index
    %74 = vector.load %arg9[%c0_74, %c192] : memref<8x256xf32, #tpu.memory_space<vmem>>, vector<8x8xf32>
    tpu.vector_store %arg9[%c0_74, %c192], %73 {strides = array<i32>} : memref<8x256xf32, #tpu.memory_space<vmem>>, vector<8x8xf32>,
    %c25 = arith.constant 25 : index
    %c0_75 = arith.constant 0 : index
    %75 = tpu.strided_load %arg8[%c25, %c0_75] {strides = array<i32: 32, 1>} : memref<256x8xf32, #tpu.memory_space<vmem>>, vector<8x8xf32>
    %c0_76 = arith.constant 0 : index
    %c200 = arith.constant 200 : index
    %76 = vector.load %arg9[%c0_76, %c200] : memref<8x256xf32, #tpu.memory_space<vmem>>, vector<8x8xf32>
    tpu.vector_store %arg9[%c0_76, %c200], %75 {strides = array<i32>} : memref<8x256xf32, #tpu.memory_space<vmem>>, vector<8x8xf32>,
    %c26 = arith.constant 26 : index
    %c0_77 = arith.constant 0 : index
    %77 = tpu.strided_load %arg8[%c26, %c0_77] {strides = array<i32: 32, 1>} : memref<256x8xf32, #tpu.memory_space<vmem>>, vector<8x8xf32>
    %c0_78 = arith.constant 0 : index
    %c208 = arith.constant 208 : index
    %78 = vector.load %arg9[%c0_78, %c208] : memref<8x256xf32, #tpu.memory_space<vmem>>, vector<8x8xf32>
    tpu.vector_store %arg9[%c0_78, %c208], %77 {strides = array<i32>} : memref<8x256xf32, #tpu.memory_space<vmem>>, vector<8x8xf32>,
    %c27 = arith.constant 27 : index
    %c0_79 = arith.constant 0 : index
    %79 = tpu.strided_load %arg8[%c27, %c0_79] {strides = array<i32: 32, 1>} : memref<256x8xf32, #tpu.memory_space<vmem>>, vector<8x8xf32>
    %c0_80 = arith.constant 0 : index
    %c216 = arith.constant 216 : index
    %80 = vector.load %arg9[%c0_80, %c216] : memref<8x256xf32, #tpu.memory_space<vmem>>, vector<8x8xf32>
    tpu.vector_store %arg9[%c0_80, %c216], %79 {strides = array<i32>} : memref<8x256xf32, #tpu.memory_space<vmem>>, vector<8x8xf32>,
    %c28 = arith.constant 28 : index
    %c0_81 = arith.constant 0 : index
    %81 = tpu.strided_load %arg8[%c28, %c0_81] {strides = array<i32: 32, 1>} : memref<256x8xf32, #tpu.memory_space<vmem>>, vector<8x8xf32>
    %c0_82 = arith.constant 0 : index
    %c224 = arith.constant 224 : index
    %82 = vector.load %arg9[%c0_82, %c224] : memref<8x256xf32, #tpu.memory_space<vmem>>, vector<8x8xf32>
    tpu.vector_store %arg9[%c0_82, %c224], %81 {strides = array<i32>} : memref<8x256xf32, #tpu.memory_space<vmem>>, vector<8x8xf32>,
    %c29 = arith.constant 29 : index
    %c0_83 = arith.constant 0 : index
    %83 = tpu.strided_load %arg8[%c29, %c0_83] {strides = array<i32: 32, 1>} : memref<256x8xf32, #tpu.memory_space<vmem>>, vector<8x8xf32>
    %c0_84 = arith.constant 0 : index
    %c232 = arith.constant 232 : index
    %84 = vector.load %arg9[%c0_84, %c232] : memref<8x256xf32, #tpu.memory_space<vmem>>, vector<8x8xf32>
    tpu.vector_store %arg9[%c0_84, %c232], %83 {strides = array<i32>} : memref<8x256xf32, #tpu.memory_space<vmem>>, vector<8x8xf32>,
    %c30 = arith.constant 30 : index
    %c0_85 = arith.constant 0 : index
    %85 = tpu.strided_load %arg8[%c30, %c0_85] {strides = array<i32: 32, 1>} : memref<256x8xf32, #tpu.memory_space<vmem>>, vector<8x8xf32>
    %c0_86 = arith.constant 0 : index
    %c240 = arith.constant 240 : index
    %86 = vector.load %arg9[%c0_86, %c240] : memref<8x256xf32, #tpu.memory_space<vmem>>, vector<8x8xf32>
    tpu.vector_store %arg9[%c0_86, %c240], %85 {strides = array<i32>} : memref<8x256xf32, #tpu.memory_space<vmem>>, vector<8x8xf32>,
    %c31 = arith.constant 31 : index
    %c0_87 = arith.constant 0 : index
    %87 = tpu.strided_load %arg8[%c31, %c0_87] {strides = array<i32: 32, 1>} : memref<256x8xf32, #tpu.memory_space<vmem>>, vector<8x8xf32>
    %c0_88 = arith.constant 0 : index
    %c248 = arith.constant 248 : index
    %88 = vector.load %arg9[%c0_88, %c248] : memref<8x256xf32, #tpu.memory_space<vmem>>, vector<8x8xf32>
    tpu.vector_store %arg9[%c0_88, %c248], %87 {strides = array<i32>} : memref<8x256xf32, #tpu.memory_space<vmem>>, vector<8x8xf32>,
    %c0_89 = arith.constant 0 : index
    %c0_90 = arith.constant 0 : index
    %89 = vector.load %arg6[%c0_89, %c0_90] : memref<16x8xbf16, #tpu.memory_space<vmem>>, vector<16x8xbf16>
    %c0_91 = arith.constant 0 : index
    %c0_92 = arith.constant 0 : index
    %90 = vector.load %arg9[%c0_91, %c0_92] : memref<8x256xf32, #tpu.memory_space<vmem>>, vector<8x256xf32>
    %91 = arith.truncf %90 : vector<8x256xf32> to vector<8x256xbf16>
    %cst_93 = arith.constant dense<0.000000e+00> : vector<16x256xf32>
    %92 = tpu.matmul %89, %91, %cst_93 {dimension_numbers = #tpu.dot_dimension_numbers<[1], [0], [0], [1], [0, 0, 1, 1], [], []>} : vector<16x8xbf16>, vector<8x256xbf16>, vector<16x256xf32> -> vector<16x256xf32>
    %93 = arith.addf %1, %92 : vector<16x256xf32>
    %c0_94 = arith.constant 0 : index
    %c0_95 = arith.constant 0 : index
    %c0_96 = arith.constant 0 : index
    %94 = vector.load %arg7[%c0_94, %c0_95, %c0_96] : memref<1x16x256xf32, #tpu.memory_space<vmem>>, vector<1x16x256xf32>
    %95 = vector.shape_cast %94 : vector<1x16x256xf32> to vector<16x256xf32>
    %96 = vector.shape_cast %93 : vector<16x256xf32> to vector<1x16x256xf32>
    tpu.vector_store %arg7[%c0_94, %c0_95, %c0_96], %96 {strides = array<i32>} : memref<1x16x256xf32, #tpu.memory_space<vmem>>, vector<1x16x256xf32>,
    return
  }
  func.func @transform_0(%arg0: i32) -> (i32, i32, i32) {
    %c0_i32 = arith.constant 0 : i32
    %c0_i32_0 = arith.constant 0 : i32
    %c0_i32_1 = arith.constant 0 : i32
    return %arg0, %c0_i32, %c0_i32_0 : i32, i32, i32
  }
  func.func @transform_1(%arg0: i32) -> (i32, i32) {
    %c0_i32 = arith.constant 0 : i32
    %c0_i32_0 = arith.constant 0 : i32
    %c0_i32_1 = arith.constant 0 : i32
    return %c0_i32, %c0_i32_0 : i32, i32
  }
  func.func @transform_2(%arg0: i32) -> (i32, i32) {
    %c0_i32 = arith.constant 0 : i32
    %c0_i32_0 = arith.constant 0 : i32
    %c0_i32_1 = arith.constant 0 : i32
    return %c0_i32, %c0_i32_0 : i32, i32
  }
  func.func @transform_3(%arg0: i32) -> (i32, i32) {
    %c0_i32 = arith.constant 0 : i32
    %c0_i32_0 = arith.constant 0 : i32
    %c0_i32_1 = arith.constant 0 : i32
    return %c0_i32, %c0_i32_0 : i32, i32
  }
  func.func @transform_4(%arg0: i32) -> (i32, i32) {
    %c0_i32 = arith.constant 0 : i32
    %c0_i32_0 = arith.constant 0 : i32
    %c0_i32_1 = arith.constant 0 : i32
    return %c0_i32, %c0_i32_0 : i32, i32
  }
  func.func @transform_5(%arg0: i32) -> (i32, i32) {
    %c0_i32 = arith.constant 0 : i32
    %c0_i32_0 = arith.constant 0 : i32
    %c0_i32_1 = arith.constant 0 : i32
    return %c0_i32, %c0_i32_0 : i32, i32
  }
  func.func @transform_6(%arg0: i32) -> (i32, i32, i32) {
    %c0_i32 = arith.constant 0 : i32
    %c0_i32_0 = arith.constant 0 : i32
    %c0_i32_1 = arith.constant 0 : i32
    return %arg0, %c0_i32, %c0_i32_0 : i32, i32, i32
  }
}

</mosaic_0001>

<bundles_post_ra>
// kernel: glore_forward.1
= control target key start
LH: loop header
LB: loop body
LE: loop exit
PB: predicated region body
PF: predicated region fallthrough
CT: control target
= control target key end

     0   :  { %s1777_s21 = smov 0   ;;  %s1946_s0 = inlined_call_operand.vmem [shape: f32[2,16,256], index: 0, kind: input, shape index: {}]   ;;  %s1947_s1 = inlined_call_operand.vmem [shape: bf16[4,16], index: 1, kind: input, shape index: {}]   ;;  %s1948_s2 = inlined_call_operand.vmem [shape: bf16[8,16], index: 2, kind: input, shape index: {}]   ;;  %s1949_s3 = inlined_call_operand.vmem [shape: bf16[4,4], index: 3, kind: input, shape index: {}]   ;;  %s1950_s4 = inlined_call_operand.vmem [shape: bf16[8,8], index: 4, kind: input, shape index: {}]   ;;  %s1951_s5 = inlined_call_operand.vmem [shape: bf16[16,8], index: 5, kind: input, shape index: {}]   ;;  %s1952_s6 = inlined_call_operand.vmem [shape: f32[2,16,256], index: 6, kind: output, shape index: {}]  }
   0x1 LB: > { %s1578_s22 = sadd.s32 4294967295, %s1722_s21   ;;  %p1582_p0 = scmp.ge.s32.totalorder %s1722_s21, 1  ;;  %s1722_s21 = sphi %s1777_s21, %s16_s21  }
   0x2   : > { %p212_p1 = scmp.lt.s32.totalorder %s1722_s21, 3 }
   0x4   : > { %p213_p2 = pnand %p1582_p0, %p212_p1 }
   0x5   : > { %p242_p3 = scmp.lt.s32.totalorder (!%p213_p2), %s1578_s22, 1  ;;  %s1727_s11 = smov (!%p213_p2), 40  }
   0x6   : > { %216 = sbr.rel (%p213_p2) target bundleno = 1505 (0x5e1), region = 44  ;;  %s1728_s12 = smov (!%p213_p2), 8  }
   0x7   : > { %s1729_s13 = smov (!%p213_p2), 16   ;;  %s1730_s14 = smov (!%p213_p2), 80  }
   0x8   : > { %s1731_s15 = smov (!%p213_p2), 24   ;;  %s1732_s16 = smov (!%p213_p2), 88  }
   0x9   : > { %s1733_s17 = smov (!%p213_p2), 32   ;;  %s1734_s18 = smov (!%p213_p2), 96  }
   0xa   : > { %s1735_s19 = smov (!%p213_p2), 48   ;;  %s1736_s20 = smov (!%p213_p2), 104  }
   0xb   : > { %v1724_v0 = vmov 0   ;;  %s1954_s22 = smov (!%p242_p3, %s1578_s22), 1  ;;  %v259_v7 = vld [vmem:[%s1947_s1] sm:$0x3]  ;;  %vm260_vm0 = vcmask 130048   ;;  %v1725_v21 = vmov 0.0  }
   0xc   : > { %296 = vmatprep.mubr.bf16.mxu0 %v1724_v0  ;;  %341 = vmatprep.mubr.bf16.mxu1 %v1724_v0  ;;  %s1612_s23 = sshll.u32 %s1954_s22, 5  ;;  %v305_v8 = vld [vmem:[%s1948_s2] sm:$0xf]  ;;  %vm1726_vm1 = vmmov 0   ;;  %vm401_vm2 = vcmask 1041408   ;;  %vm397_vm3 = vcmask 31744  }
   0xd   : > { %s1795_s26 = scalar_lea.vmem %s1946_s0, %s1612_s23  ;;  %v395_v29 = vld [vmem:[%s1949_s3] sm:$0x3]  ;;  %vm448_vm4 = vcmask 64512   ;;  %s1737_s24 = smov 56   ;;  %vm809_vm5 = vcmask 130112   ;;  %vm831_vm6 = vcmask 195712  }
   0xe   : > { %v254_v1 = vld [vmem:[%s1795_s26 + $0x8] sm:$0xff]  ;;  %v256_v2 = vld [vmem:[%s1795_s26 + $0x18] sm:$0xff]  ;;  %v253_v3 = vld [vmem:[%s1795_s26] sm:$0xff]  ;;  %s1738_s25 = smov 112   ;;  %s1739_s27 = smov 120   ;;  %vm853_vm7 = vcmask 261312  }
   0xf   : > { %v258_v4 = vpack.c.bf16 %v256_v2, %v254_v1  ;;  %v255_v5 = vld [vmem:[%s1795_s26 + $0x10] sm:$0xff]  ;;  %v446_v37 = vld [vmem:[%s1950_s4] sm:$0xf]  ;;  %s1740_s28 = smov 64   ;;  %s1741_s29 = smov 72   ;;  %vm875_vm8 = vcmask 326912  }
  0x10   : > { %v257_v6 = vpack.c.bf16 %v255_v5, %v253_v3  ;;  %vm897_vm9 = vcmask 392512   ;;  %vm919_vm10 = vcmask 458112   ;;  %vm941_vm11 = vcmask 523712   ;;  %s251_s10 = scalar_lea.vmem %s1952_s6, %s1612_s23 }
  0x11   : > { %278 = vmatprep.subr.bf16.mxu0 %v258_v4  ;;  %323 = vmatprep.subr.bf16.mxu1 %v258_v4  ;;  %vm963_vm12 = vcmask 589312   ;;  %vm985_vm13 = vcmask 654912   ;;  %vm1007_vm14 = vcmask 720512   ;;  %vm1029_vm15 = vcmask 786112  }
  0x12   : > { %279 = vmatpush1.bf16.msra.mxu0 %v257_v6  ;;  %324 = vmatpush1.bf16.msra.mxu1 %v257_v6 }
  0x13   : > { %1635 = vmatprep.subr.bf16.mxu1 %v1725_v21 }
  0x15   : > { %1587 = vmatmul.mubr.msk.bf16.vlgmr.msra.gmra.mxu0 %vm260_vm0, %v259_v7  ;;  %1588 = vmatmul.mubr.msk.bf16.vlgmr.msra.gmra.mxu1 %vm260_vm0, %v305_v8  ;;  %vm1051_vm0 = vcmask 851712  }
  0x16   : > { %1637 = vmatprep.mubr.msk.bf16.mxu1 %vm1726_vm1, %v1725_v21 }
  0xd5   : > { %v298_v9 = vpop.f32.mrf.mxu0  ;;  %v343_v10 = vpop.f32.mrf.mxu1 }
  0xd6   : > { %v350_v11 = vpack.c.bf16 %v298_v9, %v298_v9  ;;  %v352_v16 = vpack.c.bf16 %v343_v10, %v343_v10 }
  0xd7   : > { %v345_v12 = vpop.f32.mrf.mxu1  ;;  %v300_v13 = vpop.f32.mrf.mxu0 }
  0xd8   : > { %v353_v14 = vpack.c.bf16 %v345_v12, %v345_v12  ;;  %497 = vxpose.xlu0.c.b16.start.end [1/1] (short) %v350_v11, 128  ;;  %v351_v15 = vpack.c.bf16 %v300_v13, %v300_v13 }
  0xd9   : > { %v347_v17 = vpop.f32.mrf.mxu1  ;;  %v302_v18 = vpop.f32.mrf.mxu0 }
  0xda   : > { %368 = vmatprep.subr.bf16.mxu0 %v353_v14  ;;  %386 = vmatprep.mubr.bf16.mxu0 %v351_v15 }
  0xdb   : > { %v348_v19 = vpop.f32.mrf.mxu1  ;;  %369 = vmatpush1.bf16.xpose.msra.mxu0 %v352_v16  ;;  %v303_v20 = vpop.f32.mrf.mxu0 }
  0xdc   : > { %1641 = vmatprep.subr.bf16.mxu0 %v1725_v21 }
  0xe2   : > { %387 = vmatmul.mubr.bf16.vlgmr.msra.gmra.mxu0 %v350_v11 }
  0xe3   : > { %1643 = vmatprep.mubr.msk.bf16.mxu0 %vm1726_vm1, %v1725_v21  ;;  %vm1073_vm1 = vcmask 917312  }
  0xf5   : > { %513 = vxpose.xlu0.c.b16.start.end [1/1] (short) %v351_v15, 128 }
 0x13a   : > { %v505_v38 = vpop.trf.xlu0 }
 0x13e   : > { %v506_v39 = vpop.trf.xlu0 }
 0x142   : > { %v507_v40 = vpop.trf.xlu0 }
 0x146   : > { %v508_v41 = vpop.trf.xlu0 }
 0x14a   : > { %v509_v42 = vpop.trf.xlu0 }
 0x14e   : > { %v510_v43 = vpop.trf.xlu0 }
 0x152   : > { %v511_v44 = vpop.trf.xlu0 }
 0x156   : > { %v512_v45 = vpop.trf.xlu0 }
 0x15a   : > { %v521_v46 = vpop.trf.xlu0 }
 0x15e   : > { %v522_v53 = vpop.trf.xlu0 }
 0x162   : > { %v523_v55 = vpop.trf.xlu0 }
 0x166   : > { %v524_v56 = vpop.trf.xlu0 }
 0x16a   : > { %v525_v57 = vpop.trf.xlu0 }
 0x16e   : > { %v526_v58 = vpop.trf.xlu0 }
 0x172   : > { %v527_v59 = vpop.trf.xlu0 }
 0x176   : > { %v528_v60 = vpop.trf.xlu0 }
 0x1a2   : > { %v388_v22 = vpop.f32.mrf.mxu0 }
 0x1a3   : > { %v394_v23 = vmul.f32 0.00390625, %v388_v22 }
 0x1a4   : > { %v390_v24 = vpop.f32.mrf.mxu0 }
 0x1a5   : > { %v396_v25 = vpack.c.bf16 %v394_v23, %v394_v23 }
 0x1a6   : > { %v391_v26 = vpop.f32.mrf.mxu0 }
 0x1a7   : > { %v403_v27 = vsel %vm401_vm2, %v396_v25, 0  ;;  %vm1095_vm2 = vcmask 982912  }
 0x1a8   : > { %v392_v28 = vpop.f32.mrf.mxu0  ;;  %1636 = vmatpush3.bf16.msra.mxu1 %v403_v27 }
 0x1ab   : > { %1638 = vmatmul.mubr.msk.bf16.vlgmr.msra.gmra.mxu1 %vm397_vm3, %v395_v29 }
 0x1ac   : > { %1661 = vmatprep.mubr.msk.bf16.mxu1 %vm397_vm3, %v511_v44 }
 0x26b   : > { %v439_v30 = vpop.f32.mrf.mxu1 }
 0x26c   : > { %v445_v31 = vmax.f32 %v439_v30, 0.0 }
 0x26d   : > { %v1639_v32 = vpop.f32.mrf.mxu1 }
 0x26e   : > { %v447_v33 = vpack.c.bf16 %v445_v31, %v445_v31 }
 0x26f   : > { %v442_v34 = vpop.f32.mrf.mxu1 }
 0x270   : > { %v453_v35 = vsel %vm448_vm4, %v447_v33, 0 }
 0x271   : > { %v1640_v36 = vpop.f32.mrf.mxu1  ;;  %1642 = vmatpush3.bf16.xpose.msra.mxu0 %v453_v35 }
 0x278   : > { %1644 = vmatmul.mubr.msk.bf16.vlgmr.msra.gmra.mxu0 %vm448_vm4, %v446_v37 }
 0x279   : > { %1649 = vmatprep.mubr.msk.bf16.mxu0 %vm397_vm3, %v505_v38 }
 0x338   : > { %v489_v47 = vpop.f32.mrf.mxu0 }
 0x339   : > { %v495_v48 = vmax.f32 %v489_v47, 0.0 }
 0x33a   : > { %v1645_v49 = vpop.f32.mrf.mxu0 }
 0x33b   : > { %v496_v50 = vpack.c.bf16 %v495_v48, %v495_v48 }
 0x33c   : > { %v492_v51 = vpop.f32.mrf.mxu0 }
 0x33d   : > { %1683 = vmatprep.subr.msk.bf16.mxu0 %vm397_vm3, %v496_v50  ;;  %1684 = vmatprep.subr.msk.bf16.mxu1 %vm397_vm3, %v496_v50  ;;  %v578_v52 = vsel %vm397_vm3, %v496_v50, 0 }
 0x33e   : > { %v1646_v54 = vpop.f32.mrf.mxu0  ;;  %1648 = vmatpush3.bf16.xpose.msra.mxu0 %v578_v52  ;;  %1682 = vmatpush3.bf16.xpose.msra.mxu1 %v578_v52 }
 0x345   : > { %1650 = vmatmul.mubr.msk.bf16.vlgmr.msra.gmra.mxu0 %vm397_vm3, %v506_v39  ;;  %1662 = vmatmul.mubr.msk.bf16.vlgmr.msra.gmra.mxu1 %vm397_vm3, %v512_v45 }
 0x346   : > { %1653 = vmatprep.mubr.msk.bf16.mxu0 %vm397_vm3, %v507_v40  ;;  %1665 = vmatprep.mubr.msk.bf16.mxu1 %vm397_vm3, %v521_v46 }
 0x34d   : > { %1654 = vmatmul.mubr.msk.bf16.gmra.mxu0 %vm397_vm3, %v508_v41  ;;  %1666 = vmatmul.mubr.msk.bf16.gmra.mxu1 %vm397_vm3, %v522_v53 }
 0x34e   : > { %1657 = vmatprep.mubr.msk.bf16.mxu0 %vm397_vm3, %v509_v42  ;;  %1669 = vmatprep.mubr.msk.bf16.mxu1 %vm397_vm3, %v523_v55 }
 0x355   : > { %1658 = vmatmul.mubr.msk.bf16.gmra.mxu0 %vm397_vm3, %v510_v43  ;;  %1670 = vmatmul.mubr.msk.bf16.gmra.mxu1 %vm397_vm3, %v524_v56 }
 0x356   : > { %1673 = vmatprep.mubr.msk.bf16.mxu1 %vm397_vm3, %v525_v57  ;;  %1504 = vmatprep.mubr.bf16.mxu0 %v1724_v0 }
 0x35d   : > { %1674 = vmatmul.mubr.msk.bf16.gmra.mxu1 %vm397_vm3, %v526_v58 }
 0x35e   : > { %1677 = vmatprep.mubr.msk.bf16.mxu1 %vm397_vm3, %v527_v59 }
 0x365   : > { %1678 = vmatmul.mubr.msk.bf16.gmra.mxu1 %vm397_vm3, %v528_v60  ;;  %vm1117_vm3 = vcmask 1048512  }
 0x405   : > { %v1651_v61 = vpop.f32.mrf.mxu0  ;;  %v1663_v62 = vpop.f32.mrf.mxu1 }
 0x406   : > { %743 = vst.msk [vmem:[#allocation2 + $0x10] sm:$0xff] %vm448_vm4, %v1651_v61  ;;  %755 = vst.msk [vmem:[#allocation2 + $0x70] sm:$0xff] %vm448_vm4, %v1663_v62 }
 0x407   : > { %v614_v63 = vpop.f32.mrf.mxu0  ;;  %v662_v1 = vpop.f32.mrf.mxu1 }
 0x408   : > { %741 = vst.msk [vmem:[#allocation2] sm:$0xff] %vm448_vm4, %v614_v63  ;;  %753 = vst.msk [vmem:[#allocation2 + $0x60] sm:$0xff] %vm448_vm4, %v662_v1 }
 0x409   : > { %v1652_v0 = vpop.f32.mrf.mxu0  ;;  %v1664_v2 = vpop.f32.mrf.mxu1 }
 0x40a   : > { %744 = vst.msk [vmem:[#allocation2 + $0x18] sm:$0xff] %vm448_vm4, %v1652_v0  ;;  %756 = vst.msk [vmem:[#allocation2 + $0x78] sm:$0xff] %vm448_vm4, %v1664_v2 }
 0x40b   : > { %v617_v3 = vpop.f32.mrf.mxu0  ;;  %v665_v4 = vpop.f32.mrf.mxu1 }
 0x40c   : > { %742 = vst.msk [vmem:[#allocation2 + $0x8] sm:$0xff] %vm448_vm4, %v617_v3  ;;  %754 = vst.msk [vmem:[#allocation2 + $0x68] sm:$0xff] %vm448_vm4, %v665_v4 }
 0x40d   : > { %v1655_v5 = vpop.f32.mrf.mxu0  ;;  %v1667_v6 = vpop.f32.mrf.mxu1  ;;  %v1221_v20 = vld [vmem:[#allocation2 + $0x15] ss:$32 sm:$0x1]  ;;  %v1137_v24 = vld [vmem:[#allocation2 + $0x11] ss:$32 sm:$0x1] }
 0x40e   : > { %747 = vst.msk [vmem:[#allocation2 + $0x30] sm:$0xff] %vm448_vm4, %v1655_v5  ;;  %759 = vst.msk [vmem:[#allocation2 + $0x90] sm:$0xff] %vm448_vm4, %v1667_v6  ;;  %v1158_v27 = vld [vmem:[#allocation2 + $0x12] ss:$32 sm:$0x1] }
 0x40f   : > { %v630_v7 = vpop.f32.mrf.mxu0  ;;  %v678_v8 = vpop.f32.mrf.mxu1  ;;  %v1226_v31 = vld [vmem:[#allocation2 + $0x15] ss:$32 sm:$0x8]  ;;  %v1179_v34 = vld [vmem:[#allocation2 + $0x13] ss:$32 sm:$0x1] }
 0x410   : > { %745 = vst.msk [vmem:[#allocation2 + $0x20] sm:$0xff] %vm448_vm4, %v630_v7  ;;  %757 = vst.msk [vmem:[#allocation2 + $0x80] sm:$0xff] %vm448_vm4, %v678_v8  ;;  %v1142_v37 = vld [vmem:[#allocation2 + $0x11] ss:$32 sm:$0x8] }
 0x411   : > { %v1656_v9 = vpop.f32.mrf.mxu0  ;;  %v1668_v10 = vpop.f32.mrf.mxu1  ;;  %v1326_v39 = vld [vmem:[#allocation2 + $0x1a] ss:$32 sm:$0x1]  ;;  %v1163_v46 = vld [vmem:[#allocation2 + $0x12] ss:$32 sm:$0x8] }
 0x412   : > { %748 = vst.msk [vmem:[#allocation2 + $0x38] sm:$0xff] %vm448_vm4, %v1656_v9  ;;  %760 = vst.msk [vmem:[#allocation2 + $0x98] sm:$0xff] %vm448_vm4, %v1668_v10  ;;  %v1347_v50 = vld [vmem:[#allocation2 + $0x1b] ss:$32 sm:$0x1] }
 0x413   : > { %v633_v11 = vpop.f32.mrf.mxu0  ;;  %v681_v12 = vpop.f32.mrf.mxu1  ;;  %v1331_v55 = vld [vmem:[#allocation2 + $0x1a] ss:$32 sm:$0x8]  ;;  %v1200_v60 = vld [vmem:[#allocation2 + $0x14] ss:$32 sm:$0x1] }
 0x414   : > { %746 = vst.msk [vmem:[#allocation2 + $0x28] sm:$0xff] %vm448_vm4, %v633_v11  ;;  %758 = vst.msk [vmem:[#allocation2 + $0x88] sm:$0xff] %vm448_vm4, %v681_v12  ;;  %v1184_v2 = vld [vmem:[#allocation2 + $0x13] ss:$32 sm:$0x8] }
 0x415   : > { %v1659_v13 = vpop.f32.mrf.mxu0  ;;  %v1671_v14 = vpop.f32.mrf.mxu1  ;;  %v1222_v19 = vld [vmem:[#allocation2 + $0x15] ss:$32 sm:$0x2]  ;;  %v1138_v21 = vld [vmem:[#allocation2 + $0x11] ss:$32 sm:$0x2] }
 0x416   : > { %751 = vst.msk [vmem:[#allocation2 + $0x50] sm:$0xff] %vm448_vm4, %v1659_v13  ;;  %763 = vst.msk [vmem:[#allocation2 + $0xb0] sm:$0xff] %vm448_vm4, %v1671_v14  ;;  %v1159_v25 = vld [vmem:[#allocation2 + $0x12] ss:$32 sm:$0x2]  ;;  %v1223_v26 = vor.u32 %v1222_v19, %v1221_v20  ;;  %v1139_v32 = vor.u32 %v1138_v21, %v1137_v24 }
 0x417   : > { %v646_v15 = vpop.f32.mrf.mxu0  ;;  %v694_v16 = vpop.f32.mrf.mxu1  ;;  %v1180_v28 = vld [vmem:[#allocation2 + $0x13] ss:$32 sm:$0x2]  ;;  %v1160_v38 = vor.u32 %v1159_v25, %v1158_v27  ;;  %v1228_v52 = vld [vmem:[#allocation2 + $0x15] ss:$32 sm:$0x10] }
 0x418   : > { %749 = vst.msk [vmem:[#allocation2 + $0x40] sm:$0xff] %vm448_vm4, %v646_v15  ;;  %761 = vst.msk [vmem:[#allocation2 + $0xa0] sm:$0xff] %vm448_vm4, %v694_v16  ;;  %v1181_v48 = vor.u32 %v1180_v28, %v1179_v34  ;;  %v1201_v61 = vld [vmem:[#allocation2 + $0x14] ss:$32 sm:$0x2] }
 0x419   : > { %v1660_v17 = vpop.f32.mrf.mxu0  ;;  %v1672_v18 = vpop.f32.mrf.mxu1  ;;  %v1327_v33 = vld [vmem:[#allocation2 + $0x1a] ss:$32 sm:$0x2]  ;;  %v1348_v43 = vld [vmem:[#allocation2 + $0x1b] ss:$32 sm:$0x2]  ;;  %v1202_v13 = vor.u32 %v1201_v61, %v1200_v60 }
 0x41a   : > { %752 = vst.msk [vmem:[#allocation2 + $0x58] sm:$0xff] %vm448_vm4, %v1660_v17  ;;  %764 = vst.msk [vmem:[#allocation2 + $0xb8] sm:$0xff] %vm448_vm4, %v1672_v18  ;;  %v1328_v47 = vor.u32 %v1327_v33, %v1326_v39  ;;  %v1349_v58 = vor.u32 %v1348_v43, %v1347_v50  ;;  %v1144_v1 = vld [vmem:[#allocation2 + $0x11] ss:$32 sm:$0x10] }
 0x41b   : > { %v649_v22 = vpop.f32.mrf.mxu0  ;;  %v697_v23 = vpop.f32.mrf.mxu1  ;;  %v1368_v3 = vld [vmem:[#allocation2 + $0x1c] ss:$32 sm:$0x1]  ;;  %v1165_v6 = vld [vmem:[#allocation2 + $0x12] ss:$32 sm:$0x10] }
 0x41c   : > { %750 = vst.msk [vmem:[#allocation2 + $0x48] sm:$0xff] %vm448_vm4, %v649_v22  ;;  %762 = vst.msk [vmem:[#allocation2 + $0xa8] sm:$0xff] %vm448_vm4, %v697_v23  ;;  %v1369_v4 = vld [vmem:[#allocation2 + $0x1c] ss:$32 sm:$0x2] }
 0x41d   : > { %v1675_v29 = vpop.f32.mrf.mxu1  ;;  %v1224_v30 = vld [vmem:[#allocation2 + $0x15] ss:$32 sm:$0x4]  ;;  %v1140_v36 = vld [vmem:[#allocation2 + $0x11] ss:$32 sm:$0x4]  ;;  %v1370_v18 = vor.u32 %v1369_v4, %v1368_v3 }
 0x41e   : > { %767 = vst.msk [vmem:[#allocation2 + $0xd0] sm:$0xff] %vm448_vm4, %v1675_v29  ;;  %v1225_v35 = vor.u32 %v1224_v30, %v1223_v26  ;;  %v1141_v41 = vor.u32 %v1140_v36, %v1139_v32  ;;  %v1161_v42 = vld [vmem:[#allocation2 + $0x12] ss:$32 sm:$0x4] }
 0x41f   : > { %v710_v40 = vpop.f32.mrf.mxu1  ;;  %v1162_v45 = vor.u32 %v1161_v42, %v1160_v38  ;;  %v1182_v49 = vld [vmem:[#allocation2 + $0x13] ss:$32 sm:$0x4]  ;;  %v1203_v9 = vld [vmem:[#allocation2 + $0x14] ss:$32 sm:$0x4] }
 0x420   : > { %765 = vst.msk [vmem:[#allocation2 + $0xc0] sm:$0xff] %vm448_vm4, %v710_v40  ;;  %v1227_v44 = vor.u32 %v1226_v31, %v1225_v35  ;;  %v1143_v53 = vor.u32 %v1142_v37, %v1141_v41  ;;  %v1183_v57 = vor.u32 %v1182_v49, %v1181_v48  ;;  %v1333_v11 = vld [vmem:[#allocation2 + $0x1a] ss:$32 sm:$0x10]  ;;  %v1204_v23 = vor.u32 %v1203_v9, %v1202_v13 }
 0x421   : > { %v1676_v51 = vpop.f32.mrf.mxu1  ;;  %v1329_v54 = vld [vmem:[#allocation2 + $0x1a] ss:$32 sm:$0x4]  ;;  %v1350_v59 = vld [vmem:[#allocation2 + $0x1b] ss:$32 sm:$0x4]  ;;  %v1164_v0 = vor.u32 %v1163_v46, %v1162_v45 }
 0x422   : > { %768 = vst.msk [vmem:[#allocation2 + $0xd8] sm:$0xff] %vm448_vm4, %v1676_v51  ;;  %v1330_v56 = vor.u32 %v1329_v54, %v1328_v47  ;;  %v1229_v63 = vor.u32 %v1228_v52, %v1227_v44  ;;  %v1145_v5 = vor.u32 %v1144_v1, %v1143_v53  ;;  %v1351_v8 = vor.u32 %v1350_v59, %v1349_v58  ;;  %v1352_v12 = vld [vmem:[#allocation2 + $0x1b] ss:$32 sm:$0x8] }
 0x423   : > { %v713_v62 = vpop.f32.mrf.mxu1  ;;  %v1371_v14 = vld [vmem:[#allocation2 + $0x1c] ss:$32 sm:$0x4]  ;;  %v1230_v15 = vld [vmem:[#allocation2 + $0x15] ss:$32 sm:$0x20]  ;;  %v1185_v17 = vor.u32 %v1184_v2, %v1183_v57  ;;  %v1166_v22 = vor.u32 %v1165_v6, %v1164_v0 }
 0x424   : > { %766 = vst.msk [vmem:[#allocation2 + $0xc8] sm:$0xff] %vm448_vm4, %v713_v62  ;;  %v1332_v7 = vor.u32 %v1331_v55, %v1330_v56  ;;  %v1146_v16 = vld [vmem:[#allocation2 + $0x11] ss:$32 sm:$0x20]  ;;  %v1231_v20 = vor.u32 %v1230_v15, %v1229_v63  ;;  %v1353_v27 = vor.u32 %v1352_v12, %v1351_v8  ;;  %v1372_v29 = vor.u32 %v1371_v14, %v1370_v18 }
 0x425   : > { %v1679_v10 = vpop.f32.mrf.mxu1  ;;  %v1232_v21 = vld [vmem:[#allocation2 + $0x15] ss:$32 sm:$0x40]  ;;  %v1242_v24 = vld [vmem:[#allocation2 + $0x16] ss:$32 sm:$0x1]  ;;  %v1147_v25 = vor.u32 %v1146_v16, %v1145_v5 }
 0x426   : > { %771 = vst.msk [vmem:[#allocation2 + $0xf0] sm:$0xff] %vm448_vm4, %v1679_v10  ;;  %v1334_v26 = vor.u32 %v1333_v11, %v1332_v7  ;;  %v1205_v28 = vld [vmem:[#allocation2 + $0x14] ss:$32 sm:$0x8]  ;;  %v1233_v40 = vor.u32 %v1232_v21, %v1231_v20 }
 0x427   : > { %v726_v19 = vpop.f32.mrf.mxu1  ;;  %v1243_v30 = vld [vmem:[#allocation2 + $0x16] ss:$32 sm:$0x2]  ;;  %v1148_v33 = vld [vmem:[#allocation2 + $0x11] ss:$32 sm:$0x40]  ;;  %v1206_v44 = vor.u32 %v1205_v28, %v1204_v23 }
 0x428   : > { %769 = vst.msk [vmem:[#allocation2 + $0xe0] sm:$0xff] %vm448_vm4, %v726_v19  ;;  %v1245_v31 = vld [vmem:[#allocation2 + $0x16] ss:$32 sm:$0x4]  ;;  %v1244_v35 = vor.u32 %v1243_v30, %v1242_v24  ;;  %v1149_v46 = vor.u32 %v1148_v33, %v1147_v25 }
 0x429   : > { %v1680_v32 = vpop.f32.mrf.mxu1  ;;  %v1186_v34 = vld [vmem:[#allocation2 + $0x13] ss:$32 sm:$0x10]  ;;  %v1167_v36 = vld [vmem:[#allocation2 + $0x12] ss:$32 sm:$0x20] }
 0x42a   : > { %772 = vst.msk [vmem:[#allocation2 + $0xf8] sm:$0xff] %vm448_vm4, %v1680_v32  ;;  %v1187_v37 = vor.u32 %v1186_v34, %v1185_v17  ;;  %v1373_v38 = vld [vmem:[#allocation2 + $0x1c] ss:$32 sm:$0x8]  ;;  %v1168_v41 = vor.u32 %v1167_v36, %v1166_v22  ;;  %v1246_v45 = vor.u32 %v1245_v31, %v1244_v35 }
 0x42b   : > { %v729_v39 = vpop.f32.mrf.mxu1  ;;  %v1335_v42 = vld [vmem:[#allocation2 + $0x1a] ss:$32 sm:$0x20]  ;;  %v1354_v43 = vld [vmem:[#allocation2 + $0x1b] ss:$32 sm:$0x10]  ;;  %v1374_v53 = vor.u32 %v1373_v38, %v1372_v29 }
 0x42c   : > { %770 = vst.msk [vmem:[#allocation2 + $0xe8] sm:$0xff] %vm448_vm4, %v729_v39  ;;  %v1169_v47 = vld [vmem:[#allocation2 + $0x12] ss:$32 sm:$0x40]  ;;  %v1336_v48 = vor.u32 %v1335_v42, %v1334_v26  ;;  %v1355_v51 = vor.u32 %v1354_v43, %v1353_v27 }
 0x42d   : > { %v1337_v49 = vld [vmem:[#allocation2 + $0x1a] ss:$32 sm:$0x40]  ;;  %v1188_v50 = vld [vmem:[#allocation2 + $0x13] ss:$32 sm:$0x20]  ;;  %v1170_v62 = vor.u32 %v1169_v47, %v1168_v41 }
 0x42e   : > { %v1207_v52 = vld [vmem:[#allocation2 + $0x14] ss:$32 sm:$0x10]  ;;  %v1234_v54 = vld [vmem:[#allocation2 + $0x15] ss:$32 sm:$0x80]  ;;  %v1189_v1 = vor.u32 %v1188_v50, %v1187_v37  ;;  %v1338_v4 = vor.u32 %v1337_v49, %v1336_v48 }
 0x42f   : > { %v1150_v55 = vld [vmem:[#allocation2 + $0x11] ss:$32 sm:$0x80]  ;;  %v1356_v56 = vld [vmem:[#allocation2 + $0x1b] ss:$32 sm:$0x20]  ;;  %v1235_v58 = vor.u32 %v1234_v54, %v1233_v40  ;;  %v1208_v0 = vor.u32 %v1207_v52, %v1206_v44 }
 0x430   : > { %v1375_v57 = vld [vmem:[#allocation2 + $0x1c] ss:$32 sm:$0x10]  ;;  %v1151_v59 = vor.u32 %v1150_v55, %v1149_v46  ;;  %v1190_v60 = vld [vmem:[#allocation2 + $0x13] ss:$32 sm:$0x40]  ;;  %v1357_v5 = vor.u32 %v1356_v56, %v1355_v51 }
 0x431   : > { %v1247_v61 = vld [vmem:[#allocation2 + $0x16] ss:$32 sm:$0x8]  ;;  %v1171_v63 = vld [vmem:[#allocation2 + $0x12] ss:$32 sm:$0x80]  ;;  %1237 = vrot.lane.b32.xlu0 %v1235_v58, %s1727_s11  ;;  %v1376_v6 = vor.u32 %v1375_v57, %v1374_v53  ;;  %v1191_v17 = vor.u32 %v1190_v60, %v1189_v1 }
 0x432   : > { %v1248_v2 = vor.u32 %v1247_v61, %v1246_v45  ;;  %v1389_v3 = vld [vmem:[#allocation2 + $0x1d] ss:$32 sm:$0x1]  ;;  %1153 = vrot.lane.b32.xlu1 %v1151_v59, %s1728_s12  ;;  %v1339_v9 = vld [vmem:[#allocation2 + $0x1a] ss:$32 sm:$0x80]  ;;  %v1172_v13 = vor.u32 %v1171_v63, %v1170_v62 }
 0x433   : > { %v1390_v7 = vld [vmem:[#allocation2 + $0x1d] ss:$32 sm:$0x2]  ;;  %v1358_v10 = vld [vmem:[#allocation2 + $0x1b] ss:$32 sm:$0x40]  ;;  %v1340_v14 = vor.u32 %v1339_v9, %v1338_v4 }
 0x434   : > { %v1392_v8 = vld [vmem:[#allocation2 + $0x1d] ss:$32 sm:$0x4]  ;;  %v1209_v11 = vld [vmem:[#allocation2 + $0x14] ss:$32 sm:$0x20]  ;;  %v1391_v12 = vor.u32 %v1390_v7, %v1389_v3  ;;  %v1359_v24 = vor.u32 %v1358_v10, %v1357_v5 }
 0x435   : > { %v1377_v15 = vld [vmem:[#allocation2 + $0x1c] ss:$32 sm:$0x20]  ;;  %v1249_v16 = vld [vmem:[#allocation2 + $0x16] ss:$32 sm:$0x10]  ;;  %1342 = vrot.lane.b32.xlu0 %v1340_v14, %s1730_s14  ;;  %v1210_v25 = vor.u32 %v1209_v11, %v1208_v0 }
 0x436   : > { %v1192_v18 = vld [vmem:[#allocation2 + $0x13] ss:$32 sm:$0x80]  ;;  %v1360_v19 = vld [vmem:[#allocation2 + $0x1b] ss:$32 sm:$0x80]  ;;  %v1250_v22 = vor.u32 %v1249_v16, %v1248_v2  ;;  %v1393_v23 = vor.u32 %v1392_v8, %v1391_v12  ;;  %1174 = vrot.lane.b32.xlu1 %v1172_v13, %s1729_s13  ;;  %v1378_v26 = vor.u32 %v1377_v15, %v1376_v6 }
 0x437   : > { %v1211_v20 = vld [vmem:[#allocation2 + $0x14] ss:$32 sm:$0x40]  ;;  %v1379_v21 = vld [vmem:[#allocation2 + $0x1c] ss:$32 sm:$0x40]  ;;  %v1193_v33 = vor.u32 %v1192_v18, %v1191_v17  ;;  %v1361_v34 = vor.u32 %v1360_v19, %v1359_v24 }
 0x438   : > { %v1251_v27 = vld [vmem:[#allocation2 + $0x16] ss:$32 sm:$0x20]  ;;  %v1394_v28 = vld [vmem:[#allocation2 + $0x1d] ss:$32 sm:$0x8]  ;;  %v1212_v43 = vor.u32 %v1211_v20, %v1210_v25  ;;  %v1380_v44 = vor.u32 %v1379_v21, %v1378_v26 }
 0x439   : > { %v1213_v29 = vld [vmem:[#allocation2 + $0x14] ss:$32 sm:$0x80]  ;;  %v1395_v30 = vor.u32 %v1394_v28, %v1393_v23  ;;  %v1263_v31 = vld [vmem:[#allocation2 + $0x17] ss:$32 sm:$0x1]  ;;  %v1252_v40 = vor.u32 %v1251_v27, %v1250_v22  ;;  %1363 = vrot.lane.b32.xlu0 %v1361_v34, %s1732_s16 }
 0x43a   : > { %v1264_v32 = vld [vmem:[#allocation2 + $0x17] ss:$32 sm:$0x2]  ;;  %v1253_v35 = vld [vmem:[#allocation2 + $0x16] ss:$32 sm:$0x40]  ;;  %1195 = vrot.lane.b32.xlu1 %v1193_v33, %s1731_s15  ;;  %v1214_v52 = vor.u32 %v1213_v29, %v1212_v43 }
 0x43b   : > { %v1396_v36 = vld [vmem:[#allocation2 + $0x1d] ss:$32 sm:$0x10]  ;;  %v1265_v37 = vor.u32 %v1264_v32, %v1263_v31  ;;  %v1266_v38 = vld [vmem:[#allocation2 + $0x17] ss:$32 sm:$0x4]  ;;  %v1254_v58 = vor.u32 %v1253_v35, %v1252_v40 }
 0x43c   : > { %v1381_v39 = vld [vmem:[#allocation2 + $0x1c] ss:$32 sm:$0x80]  ;;  %v1397_v41 = vor.u32 %v1396_v36, %v1395_v30  ;;  %v1398_v42 = vld [vmem:[#allocation2 + $0x1d] ss:$32 sm:$0x20] }
 0x43d   : > { %v1255_v45 = vld [vmem:[#allocation2 + $0x16] ss:$32 sm:$0x80]  ;;  %v1400_v46 = vld [vmem:[#allocation2 + $0x1d] ss:$32 sm:$0x40]  ;;  %v1267_v47 = vor.u32 %v1266_v38, %v1265_v37  ;;  %v1382_v53 = vor.u32 %v1381_v39, %v1380_v44 }
 0x43e   : > { %v1268_v48 = vld [vmem:[#allocation2 + $0x17] ss:$32 sm:$0x8]  ;;  %v1399_v49 = vor.u32 %v1398_v42, %v1397_v41  ;;  %v1410_v50 = vld [vmem:[#allocation2 + $0x1e] ss:$32 sm:$0x1]  ;;  %1216 = vrot.lane.b32.xlu1 %v1214_v52, %s1733_s17  ;;  %v1256_v2 = vor.u32 %v1255_v45, %v1254_v58 }
 0x43f   : > { %v1411_v51 = vld [vmem:[#allocation2 + $0x1e] ss:$32 sm:$0x2]  ;;  %v1402_v54 = vld [vmem:[#allocation2 + $0x1d] ss:$32 sm:$0x80]  ;;  %v1269_v55 = vor.u32 %v1268_v48, %v1267_v47  ;;  %1384 = vrot.lane.b32.xlu0 %v1382_v53, %s1734_s18 }
 0x440   : > { %v1412_v56 = vor.u32 %v1411_v51, %v1410_v50  ;;  %v1413_v57 = vld [vmem:[#allocation2 + $0x1e] ss:$32 sm:$0x4]  ;;  %v1270_v59 = vld [vmem:[#allocation2 + $0x17] ss:$32 sm:$0x10]  ;;  %v1401_v61 = vor.u32 %v1400_v46, %v1399_v49 }
 0x441   : > { %v1272_v60 = vld [vmem:[#allocation2 + $0x17] ss:$32 sm:$0x20]  ;;  %v1271_v62 = vor.u32 %v1270_v59, %v1269_v55  ;;  %v1415_v0 = vld [vmem:[#allocation2 + $0x1e] ss:$32 sm:$0x8] }
 0x442   : > { %v1274_v63 = vld [vmem:[#allocation2 + $0x17] ss:$32 sm:$0x40]  ;;  %v1414_v1 = vor.u32 %v1413_v57, %v1412_v56  ;;  %v790_v3 = vld [vmem:[#allocation2 + $0x1] ss:$32 sm:$0x1]  ;;  %v1403_v5 = vor.u32 %v1402_v54, %v1401_v61  ;;  %1258 = vrot.lane.b32.xlu1 %v1256_v2, %s1735_s19 }
 0x443   : > { %v791_v4 = vld [vmem:[#allocation2 + $0x1] ss:$32 sm:$0x2]  ;;  %v1273_v6 = vor.u32 %v1272_v60, %v1271_v62  ;;  %v1276_v7 = vld [vmem:[#allocation2 + $0x17] ss:$32 sm:$0x80] }
 0x444   : > { %v1416_v8 = vor.u32 %v1415_v0, %v1414_v1  ;;  %v792_v9 = vor.u32 %v791_v4, %v790_v3  ;;  %v793_v10 = vld [vmem:[#allocation2 + $0x1] ss:$32 sm:$0x4]  ;;  %v1417_v11 = vld [vmem:[#allocation2 + $0x1e] ss:$32 sm:$0x10]  ;;  %1405 = vrot.lane.b32.xlu0 %v1403_v5, %s1736_s20 }
 0x445   : > { %v1419_v12 = vld [vmem:[#allocation2 + $0x1e] ss:$32 sm:$0x20]  ;;  %v1275_v13 = vor.u32 %v1274_v63, %v1273_v6  ;;  %v795_v17 = vld [vmem:[#allocation2 + $0x1] ss:$32 sm:$0x8] }
 0x446   : > { %v1418_v14 = vor.u32 %v1417_v11, %v1416_v8  ;;  %v1421_v15 = vld [vmem:[#allocation2 + $0x1e] ss:$32 sm:$0x40]  ;;  %v794_v16 = vor.u32 %v793_v10, %v792_v9  ;;  %v1431_v18 = vld [vmem:[#allocation2 + $0x1f] ss:$32 sm:$0x1] }
 0x447   : > { %v1432_v19 = vld [vmem:[#allocation2 + $0x1f] ss:$32 sm:$0x2]  ;;  %v1277_v20 = vor.u32 %v1276_v7, %v1275_v13  ;;  %v1423_v22 = vld [vmem:[#allocation2 + $0x1e] ss:$32 sm:$0x80] }
 0x448   : > { %v1420_v21 = vor.u32 %v1419_v12, %v1418_v14  ;;  %v796_v23 = vor.u32 %v795_v17, %v794_v16  ;;  %v1433_v24 = vor.u32 %v1432_v19, %v1431_v18  ;;  %v1434_v25 = vld [vmem:[#allocation2 + $0x1f] ss:$32 sm:$0x4]  ;;  %v797_v26 = vld [vmem:[#allocation2 + $0x1] ss:$32 sm:$0x10] }
 0x449   : > { %v799_v27 = vld [vmem:[#allocation2 + $0x1] ss:$32 sm:$0x20]  ;;  %1279 = vrot.lane.b32.xlu1 %v1277_v20, %s1737_s24  ;;  %v1436_v32 = vld [vmem:[#allocation2 + $0x1f] ss:$32 sm:$0x8] }
 0x44a   : > { %v1422_v28 = vor.u32 %v1421_v15, %v1420_v21  ;;  %v798_v29 = vor.u32 %v797_v26, %v796_v23  ;;  %v801_v30 = vld [vmem:[#allocation2 + $0x1] ss:$32 sm:$0x40]  ;;  %v1435_v31 = vor.u32 %v1434_v25, %v1433_v24  ;;  %v812_v33 = vld [vmem:[#allocation2 + $0x2] ss:$32 sm:$0x1] }
 0x44b   : > { %v813_v34 = vld [vmem:[#allocation2 + $0x2] ss:$32 sm:$0x2]  ;;  %v803_v37 = vld [vmem:[#allocation2 + $0x1] ss:$32 sm:$0x80] }
 0x44c   : > { %v1424_v35 = vor.u32 %v1423_v22, %v1422_v28  ;;  %v800_v36 = vor.u32 %v799_v27, %v798_v29  ;;  %v1437_v38 = vor.u32 %v1436_v32, %v1435_v31  ;;  %v814_v39 = vor.u32 %v813_v34, %v812_v33  ;;  %v815_v40 = vld [vmem:[#allocation2 + $0x2] ss:$32 sm:$0x4]  ;;  %v1438_v41 = vld [vmem:[#allocation2 + $0x1f] ss:$32 sm:$0x10] }
 0x44d   : > { %v1440_v42 = vld [vmem:[#allocation2 + $0x1f] ss:$32 sm:$0x20]  ;;  %v817_v47 = vld [vmem:[#allocation2 + $0x2] ss:$32 sm:$0x8] }
 0x44e   : > { %1426 = vrot.lane.b32.xlu0 %v1424_v35, %s1738_s25  ;;  %v802_v43 = vor.u32 %v801_v30, %v800_v36  ;;  %v1439_v44 = vor.u32 %v1438_v41, %v1437_v38  ;;  %v1442_v45 = vld [vmem:[#allocation2 + $0x1f] ss:$32 sm:$0x40]  ;;  %v816_v46 = vor.u32 %v815_v40, %v814_v39  ;;  %v834_v48 = vld [vmem:[#allocation2 + $0x3] ss:$32 sm:$0x1] }
 0x44f   : > { %v835_v49 = vld [vmem:[#allocation2 + $0x3] ss:$32 sm:$0x2]  ;;  %v1444_v52 = vld [vmem:[#allocation2 + $0x1f] ss:$32 sm:$0x80] }
 0x450   : > { %v804_v50 = vor.u32 %v803_v37, %v802_v43  ;;  %v1441_v51 = vor.u32 %v1440_v42, %v1439_v44  ;;  %v818_v53 = vor.u32 %v817_v47, %v816_v46  ;;  %v836_v54 = vor.u32 %v835_v49, %v834_v48  ;;  %v837_v55 = vld [vmem:[#allocation2 + $0x3] ss:$32 sm:$0x4]  ;;  %v819_v56 = vld [vmem:[#allocation2 + $0x2] ss:$32 sm:$0x10] }
 0x451   : > { %v821_v57 = vld [vmem:[#allocation2 + $0x2] ss:$32 sm:$0x20]  ;;  %v839_v62 = vld [vmem:[#allocation2 + $0x3] ss:$32 sm:$0x8] }
 0x452   : > { %806 = vrot.lane.b32.xlu1 %v804_v50, %s1728_s12  ;;  %v1443_v58 = vor.u32 %v1442_v45, %v1441_v51  ;;  %v820_v59 = vor.u32 %v819_v56, %v818_v53  ;;  %v823_v60 = vld [vmem:[#allocation2 + $0x2] ss:$32 sm:$0x40]  ;;  %v838_v61 = vor.u32 %v837_v55, %v836_v54  ;;  %v856_v63 = vld [vmem:[#allocation2 + $0x4] ss:$32 sm:$0x1] }
 0x453   : > { %v857_v1 = vld [vmem:[#allocation2 + $0x4] ss:$32 sm:$0x2]  ;;  %v825_v3 = vld [vmem:[#allocation2 + $0x2] ss:$32 sm:$0x80] }
 0x454   : > { %v1445_v0 = vor.u32 %v1444_v52, %v1443_v58  ;;  %v822_v2 = vor.u32 %v821_v57, %v820_v59  ;;  %v840_v4 = vor.u32 %v839_v62, %v838_v61  ;;  %v858_v5 = vor.u32 %v857_v1, %v856_v63  ;;  %v859_v6 = vld [vmem:[#allocation2 + $0x4] ss:$32 sm:$0x4]  ;;  %v841_v7 = vld [vmem:[#allocation2 + $0x3] ss:$32 sm:$0x10] }
 0x455   : > { %v843_v8 = vld [vmem:[#allocation2 + $0x3] ss:$32 sm:$0x20]  ;;  %v861_v13 = vld [vmem:[#allocation2 + $0x4] ss:$32 sm:$0x8] }
 0x456   : > { %1447 = vrot.lane.b32.xlu0 %v1445_v0, %s1739_s27  ;;  %v824_v9 = vor.u32 %v823_v60, %v822_v2  ;;  %v842_v10 = vor.u32 %v841_v7, %v840_v4  ;;  %v845_v11 = vld [vmem:[#allocation2 + $0x3] ss:$32 sm:$0x40]  ;;  %v860_v12 = vor.u32 %v859_v6, %v858_v5  ;;  %v878_v14 = vld [vmem:[#allocation2 + $0x5] ss:$32 sm:$0x1] }
 0x457   : > { %v879_v15 = vld [vmem:[#allocation2 + $0x5] ss:$32 sm:$0x2]  ;;  %v847_v18 = vld [vmem:[#allocation2 + $0x3] ss:$32 sm:$0x80] }
 0x458   : > { %v826_v16 = vor.u32 %v825_v3, %v824_v9  ;;  %v844_v17 = vor.u32 %v843_v8, %v842_v10  ;;  %v862_v19 = vor.u32 %v861_v13, %v860_v12  ;;  %v880_v20 = vor.u32 %v879_v15, %v878_v14  ;;  %v881_v21 = vld [vmem:[#allocation2 + $0x5] ss:$32 sm:$0x4]  ;;  %v863_v22 = vld [vmem:[#allocation2 + $0x4] ss:$32 sm:$0x10] }
 0x459   : > { %v865_v23 = vld [vmem:[#allocation2 + $0x4] ss:$32 sm:$0x20]  ;;  %v883_v28 = vld [vmem:[#allocation2 + $0x5] ss:$32 sm:$0x8] }
 0x45a   : > { %828 = vrot.lane.b32.xlu1 %v826_v16, %s1729_s13  ;;  %v846_v24 = vor.u32 %v845_v11, %v844_v17  ;;  %v864_v25 = vor.u32 %v863_v22, %v862_v19  ;;  %v867_v26 = vld [vmem:[#allocation2 + $0x4] ss:$32 sm:$0x40]  ;;  %v882_v27 = vor.u32 %v881_v21, %v880_v20  ;;  %v900_v29 = vld [vmem:[#allocation2 + $0x6] ss:$32 sm:$0x1] }
 0x45b   : > { %v901_v30 = vld [vmem:[#allocation2 + $0x6] ss:$32 sm:$0x2]  ;;  %v869_v33 = vld [vmem:[#allocation2 + $0x4] ss:$32 sm:$0x80] }
 0x45c   : > { %v848_v31 = vor.u32 %v847_v18, %v846_v24  ;;  %v866_v32 = vor.u32 %v865_v23, %v864_v25  ;;  %v884_v34 = vor.u32 %v883_v28, %v882_v27  ;;  %v902_v35 = vor.u32 %v901_v30, %v900_v29  ;;  %v903_v36 = vld [vmem:[#allocation2 + $0x6] ss:$32 sm:$0x4]  ;;  %v885_v37 = vld [vmem:[#allocation2 + $0x5] ss:$32 sm:$0x10] }
 0x45d   : > { %v887_v38 = vld [vmem:[#allocation2 + $0x5] ss:$32 sm:$0x20]  ;;  %v905_v43 = vld [vmem:[#allocation2 + $0x6] ss:$32 sm:$0x8] }
 0x45e   : > { %850 = vrot.lane.b32.xlu1 %v848_v31, %s1731_s15  ;;  %v868_v39 = vor.u32 %v867_v26, %v866_v32  ;;  %v886_v40 = vor.u32 %v885_v37, %v884_v34  ;;  %v889_v41 = vld [vmem:[#allocation2 + $0x5] ss:$32 sm:$0x40]  ;;  %v904_v42 = vor.u32 %v903_v36, %v902_v35  ;;  %v922_v44 = vld [vmem:[#allocation2 + $0x7] ss:$32 sm:$0x1] }
 0x45f   : > { %v923_v45 = vld [vmem:[#allocation2 + $0x7] ss:$32 sm:$0x2]  ;;  %v891_v48 = vld [vmem:[#allocation2 + $0x5] ss:$32 sm:$0x80] }
 0x460   : > { %v870_v46 = vor.u32 %v869_v33, %v868_v39  ;;  %v888_v47 = vor.u32 %v887_v38, %v886_v40  ;;  %v906_v49 = vor.u32 %v905_v43, %v904_v42  ;;  %v924_v50 = vor.u32 %v923_v45, %v922_v44  ;;  %v925_v51 = vld [vmem:[#allocation2 + $0x7] ss:$32 sm:$0x4]  ;;  %v907_v52 = vld [vmem:[#allocation2 + $0x6] ss:$32 sm:$0x10] }
 0x461   : > { %v909_v53 = vld [vmem:[#allocation2 + $0x6] ss:$32 sm:$0x20]  ;;  %v927_v58 = vld [vmem:[#allocation2 + $0x7] ss:$32 sm:$0x8] }
 0x462   : > { %872 = vrot.lane.b32.xlu1 %v870_v46, %s1733_s17  ;;  %v890_v54 = vor.u32 %v889_v41, %v888_v47  ;;  %v908_v55 = vor.u32 %v907_v52, %v906_v49  ;;  %v911_v56 = vld [vmem:[#allocation2 + $0x6] ss:$32 sm:$0x40]  ;;  %v926_v57 = vor.u32 %v925_v51, %v924_v50  ;;  %v1284_v59 = vld [vmem:[#allocation2 + $0x18] ss:$32 sm:$0x1] }
 0x463   : > { %v1285_v60 = vld [vmem:[#allocation2 + $0x18] ss:$32 sm:$0x2]  ;;  %v913_v63 = vld [vmem:[#allocation2 + $0x6] ss:$32 sm:$0x80] }
 0x464   : > { %v892_v61 = vor.u32 %v891_v48, %v890_v54  ;;  %v910_v62 = vor.u32 %v909_v53, %v908_v55  ;;  %v928_v1 = vor.u32 %v927_v58, %v926_v57  ;;  %v1286_v0 = vor.u32 %v1285_v60, %v1284_v59  ;;  %v1287_v2 = vld [vmem:[#allocation2 + $0x18] ss:$32 sm:$0x4]  ;;  %v929_v3 = vld [vmem:[#allocation2 + $0x7] ss:$32 sm:$0x10] }
 0x465   : > { %v931_v4 = vld [vmem:[#allocation2 + $0x7] ss:$32 sm:$0x20]  ;;  %v1289_v9 = vld [vmem:[#allocation2 + $0x18] ss:$32 sm:$0x8] }
 0x466   : > { %894 = vrot.lane.b32.xlu1 %v892_v61, %s1727_s11  ;;  %v912_v5 = vor.u32 %v911_v56, %v910_v62  ;;  %v930_v6 = vor.u32 %v929_v3, %v928_v1  ;;  %v933_v7 = vld [vmem:[#allocation2 + $0x7] ss:$32 sm:$0x40]  ;;  %v1288_v8 = vor.u32 %v1287_v2, %v1286_v0  ;;  %v1305_v10 = vld [vmem:[#allocation2 + $0x19] ss:$32 sm:$0x1] }
 0x467   : > { %v1306_v11 = vld [vmem:[#allocation2 + $0x19] ss:$32 sm:$0x2]  ;;  %v935_v14 = vld [vmem:[#allocation2 + $0x7] ss:$32 sm:$0x80] }
 0x468   : > { %v914_v12 = vor.u32 %v913_v63, %v912_v5  ;;  %v932_v13 = vor.u32 %v931_v4, %v930_v6  ;;  %v1290_v15 = vor.u32 %v1289_v9, %v1288_v8  ;;  %v1307_v16 = vor.u32 %v1306_v11, %v1305_v10  ;;  %v1308_v17 = vld [vmem:[#allocation2 + $0x19] ss:$32 sm:$0x4]  ;;  %v1291_v18 = vld [vmem:[#allocation2 + $0x18] ss:$32 sm:$0x10] }
 0x469   : > { %v1293_v19 = vld [vmem:[#allocation2 + $0x18] ss:$32 sm:$0x20]  ;;  %v1310_v24 = vld [vmem:[#allocation2 + $0x19] ss:$32 sm:$0x8] }
 0x46a   : > { %916 = vrot.lane.b32.xlu1 %v914_v12, %s1735_s19  ;;  %v934_v20 = vor.u32 %v933_v7, %v932_v13  ;;  %v1292_v21 = vor.u32 %v1291_v18, %v1290_v15  ;;  %v1295_v22 = vld [vmem:[#allocation2 + $0x18] ss:$32 sm:$0x40]  ;;  %v1309_v23 = vor.u32 %v1308_v17, %v1307_v16  ;;  %v944_v25 = vld [vmem:[#allocation2 + $0x8] ss:$32 sm:$0x1] }
 0x46b   : > { %v945_v26 = vld [vmem:[#allocation2 + $0x8] ss:$32 sm:$0x2]  ;;  %v1297_v29 = vld [vmem:[#allocation2 + $0x18] ss:$32 sm:$0x80] }
 0x46c   : > { %v936_v27 = vor.u32 %v935_v14, %v934_v20  ;;  %v1294_v28 = vor.u32 %v1293_v19, %v1292_v21  ;;  %v1311_v30 = vor.u32 %v1310_v24, %v1309_v23  ;;  %v946_v31 = vor.u32 %v945_v26, %v944_v25  ;;  %v947_v32 = vld [vmem:[#allocation2 + $0x8] ss:$32 sm:$0x4]  ;;  %v1312_v33 = vld [vmem:[#allocation2 + $0x19] ss:$32 sm:$0x10] }
 0x46d   : > { %v1314_v34 = vld [vmem:[#allocation2 + $0x19] ss:$32 sm:$0x20]  ;;  %v949_v39 = vld [vmem:[#allocation2 + $0x8] ss:$32 sm:$0x8] }
 0x46e   : > { %938 = vrot.lane.b32.xlu1 %v936_v27, %s1737_s24  ;;  %v1296_v35 = vor.u32 %v1295_v22, %v1294_v28  ;;  %v1313_v36 = vor.u32 %v1312_v33, %v1311_v30  ;;  %v1316_v37 = vld [vmem:[#allocation2 + $0x19] ss:$32 sm:$0x40]  ;;  %v948_v38 = vor.u32 %v947_v32, %v946_v31  ;;  %v966_v40 = vld [vmem:[#allocation2 + $0x9] ss:$32 sm:$0x1] }
 0x46f   : > { %v967_v41 = vld [vmem:[#allocation2 + $0x9] ss:$32 sm:$0x2]  ;;  %v1318_v44 = vld [vmem:[#allocation2 + $0x19] ss:$32 sm:$0x80] }
 0x470   : > { %v1298_v42 = vor.u32 %v1297_v29, %v1296_v35  ;;  %v1315_v43 = vor.u32 %v1314_v34, %v1313_v36  ;;  %v950_v45 = vor.u32 %v949_v39, %v948_v38  ;;  %v968_v46 = vor.u32 %v967_v41, %v966_v40  ;;  %v969_v47 = vld [vmem:[#allocation2 + $0x9] ss:$32 sm:$0x4]  ;;  %v951_v48 = vld [vmem:[#allocation2 + $0x8] ss:$32 sm:$0x10] }
 0x471   : > { %v953_v49 = vld [vmem:[#allocation2 + $0x8] ss:$32 sm:$0x20]  ;;  %v971_v54 = vld [vmem:[#allocation2 + $0x9] ss:$32 sm:$0x8] }
 0x472   : > { %1300 = vrot.lane.b32.xlu1 %v1298_v42, %s1740_s28  ;;  %v1317_v50 = vor.u32 %v1316_v37, %v1315_v43  ;;  %v952_v51 = vor.u32 %v951_v48, %v950_v45  ;;  %v955_v52 = vld [vmem:[#allocation2 + $0x8] ss:$32 sm:$0x40]  ;;  %v970_v53 = vor.u32 %v969_v47, %v968_v46  ;;  %v988_v55 = vld [vmem:[#allocation2 + $0xa] ss:$32 sm:$0x1] }
 0x473   : > { %v989_v56 = vld [vmem:[#allocation2 + $0xa] ss:$32 sm:$0x2]  ;;  %v957_v59 = vld [vmem:[#allocation2 + $0x8] ss:$32 sm:$0x80] }
 0x474   : > { %v1319_v57 = vor.u32 %v1318_v44, %v1317_v50  ;;  %v954_v58 = vor.u32 %v953_v49, %v952_v51  ;;  %v972_v60 = vor.u32 %v971_v54, %v970_v53  ;;  %v990_v61 = vor.u32 %v989_v56, %v988_v55  ;;  %v991_v62 = vld [vmem:[#allocation2 + $0xa] ss:$32 sm:$0x4]  ;;  %v973_v63 = vld [vmem:[#allocation2 + $0x9] ss:$32 sm:$0x10] }
 0x475   : > { %v975_v1 = vld [vmem:[#allocation2 + $0x9] ss:$32 sm:$0x20]  ;;  %v993_v5 = vld [vmem:[#allocation2 + $0xa] ss:$32 sm:$0x8] }
 0x476   : > { %1321 = vrot.lane.b32.xlu1 %v1319_v57, %s1741_s29  ;;  %v956_v0 = vor.u32 %v955_v52, %v954_v58  ;;  %v974_v2 = vor.u32 %v973_v63, %v972_v60  ;;  %v977_v3 = vld [vmem:[#allocation2 + $0x9] ss:$32 sm:$0x40]  ;;  %v992_v4 = vor.u32 %v991_v62, %v990_v61  ;;  %v1010_v6 = vld [vmem:[#allocation2 + $0xb] ss:$32 sm:$0x1] }
 0x477   : > { %v1011_v7 = vld [vmem:[#allocation2 + $0xb] ss:$32 sm:$0x2]  ;;  %v979_v10 = vld [vmem:[#allocation2 + $0x9] ss:$32 sm:$0x80] }
 0x478   : > { %v958_v8 = vor.u32 %v957_v59, %v956_v0  ;;  %v976_v9 = vor.u32 %v975_v1, %v974_v2  ;;  %v994_v11 = vor.u32 %v993_v5, %v992_v4  ;;  %v1012_v12 = vor.u32 %v1011_v7, %v1010_v6  ;;  %v1013_v13 = vld [vmem:[#allocation2 + $0xb] ss:$32 sm:$0x4]  ;;  %v995_v14 = vld [vmem:[#allocation2 + $0xa] ss:$32 sm:$0x10] }
 0x479   : > { %v997_v15 = vld [vmem:[#allocation2 + $0xa] ss:$32 sm:$0x20]  ;;  %v1015_v20 = vld [vmem:[#allocation2 + $0xb] ss:$32 sm:$0x8] }
 0x47a   : > { %960 = vrot.lane.b32.xlu1 %v958_v8, %s1740_s28  ;;  %v978_v16 = vor.u32 %v977_v3, %v976_v9  ;;  %v996_v17 = vor.u32 %v995_v14, %v994_v11  ;;  %v999_v18 = vld [vmem:[#allocation2 + $0xa] ss:$32 sm:$0x40]  ;;  %v1014_v19 = vor.u32 %v1013_v13, %v1012_v12  ;;  %v1032_v21 = vld [vmem:[#allocation2 + $0xc] ss:$32 sm:$0x1] }
 0x47b   : > { %v1033_v22 = vld [vmem:[#allocation2 + $0xc] ss:$32 sm:$0x2]  ;;  %v1001_v25 = vld [vmem:[#allocation2 + $0xa] ss:$32 sm:$0x80] }
 0x47c   : > { %v980_v23 = vor.u32 %v979_v10, %v978_v16  ;;  %v998_v24 = vor.u32 %v997_v15, %v996_v17  ;;  %v1016_v26 = vor.u32 %v1015_v20, %v1014_v19  ;;  %v1034_v27 = vor.u32 %v1033_v22, %v1032_v21  ;;  %v1035_v28 = vld [vmem:[#allocation2 + $0xc] ss:$32 sm:$0x4]  ;;  %v1017_v29 = vld [vmem:[#allocation2 + $0xb] ss:$32 sm:$0x10] }
 0x47d   : > { %v1019_v30 = vld [vmem:[#allocation2 + $0xb] ss:$32 sm:$0x20]  ;;  %v1037_v35 = vld [vmem:[#allocation2 + $0xc] ss:$32 sm:$0x8] }
 0x47e   : > { %982 = vrot.lane.b32.xlu1 %v980_v23, %s1741_s29  ;;  %v1000_v31 = vor.u32 %v999_v18, %v998_v24  ;;  %v1018_v32 = vor.u32 %v1017_v29, %v1016_v26  ;;  %v1021_v33 = vld [vmem:[#allocation2 + $0xb] ss:$32 sm:$0x40]  ;;  %v1036_v34 = vor.u32 %v1035_v28, %v1034_v27  ;;  %v1054_v36 = vld [vmem:[#allocation2 + $0xd] ss:$32 sm:$0x1] }
 0x47f   : > { %v1055_v37 = vld [vmem:[#allocation2 + $0xd] ss:$32 sm:$0x2]  ;;  %v1023_v40 = vld [vmem:[#allocation2 + $0xb] ss:$32 sm:$0x80] }
 0x480   : > { %v1002_v38 = vor.u32 %v1001_v25, %v1000_v31  ;;  %v1020_v39 = vor.u32 %v1019_v30, %v1018_v32  ;;  %v1038_v41 = vor.u32 %v1037_v35, %v1036_v34  ;;  %v1056_v42 = vor.u32 %v1055_v37, %v1054_v36  ;;  %v1057_v43 = vld [vmem:[#allocation2 + $0xd] ss:$32 sm:$0x4]  ;;  %v1039_v44 = vld [vmem:[#allocation2 + $0xc] ss:$32 sm:$0x10] }
 0x481   : > { %v1041_v45 = vld [vmem:[#allocation2 + $0xc] ss:$32 sm:$0x20]  ;;  %v1059_v50 = vld [vmem:[#allocation2 + $0xd] ss:$32 sm:$0x8] }
 0x482   : > { %1004 = vrot.lane.b32.xlu1 %v1002_v38, %s1730_s14  ;;  %v1022_v46 = vor.u32 %v1021_v33, %v1020_v39  ;;  %v1040_v47 = vor.u32 %v1039_v44, %v1038_v41  ;;  %v1043_v48 = vld [vmem:[#allocation2 + $0xc] ss:$32 sm:$0x40]  ;;  %v1058_v49 = vor.u32 %v1057_v43, %v1056_v42  ;;  %v1076_v51 = vld [vmem:[#allocation2 + $0xe] ss:$32 sm:$0x1] }
 0x483   : > { %v1077_v52 = vld [vmem:[#allocation2 + $0xe] ss:$32 sm:$0x2]  ;;  %v1045_v55 = vld [vmem:[#allocation2 + $0xc] ss:$32 sm:$0x80] }
 0x484   : > { %v1024_v53 = vor.u32 %v1023_v40, %v1022_v46  ;;  %v1042_v54 = vor.u32 %v1041_v45, %v1040_v47  ;;  %v1060_v56 = vor.u32 %v1059_v50, %v1058_v49  ;;  %v1078_v57 = vor.u32 %v1077_v52, %v1076_v51  ;;  %v1079_v58 = vld [vmem:[#allocation2 + $0xe] ss:$32 sm:$0x4]  ;;  %v1061_v59 = vld [vmem:[#allocation2 + $0xd] ss:$32 sm:$0x10] }
 0x485   : > { %v1063_v60 = vld [vmem:[#allocation2 + $0xd] ss:$32 sm:$0x20]  ;;  %v1081_v0 = vld [vmem:[#allocation2 + $0xe] ss:$32 sm:$0x8] }
 0x486   : > { %1026 = vrot.lane.b32.xlu1 %v1024_v53, %s1732_s16  ;;  %v1044_v61 = vor.u32 %v1043_v48, %v1042_v54  ;;  %v1062_v62 = vor.u32 %v1061_v59, %v1060_v56  ;;  %v1065_v63 = vld [vmem:[#allocation2 + $0xd] ss:$32 sm:$0x40]  ;;  %v1080_v1 = vor.u32 %v1079_v58, %v1078_v57  ;;  %v1098_v2 = vld [vmem:[#allocation2 + $0xf] ss:$32 sm:$0x1] }
 0x487   : > { %v1099_v3 = vld [vmem:[#allocation2 + $0xf] ss:$32 sm:$0x2]  ;;  %v1067_v9 = vld [vmem:[#allocation2 + $0xd] ss:$32 sm:$0x80] }
 0x488   : > { %v1046_v4 = vor.u32 %v1045_v55, %v1044_v61  ;;  %v1064_v5 = vor.u32 %v1063_v60, %v1062_v62  ;;  %v1082_v6 = vor.u32 %v1081_v0, %v1080_v1  ;;  %v1100_v7 = vor.u32 %v1099_v3, %v1098_v2  ;;  %v1101_v8 = vld [vmem:[#allocation2 + $0xf] ss:$32 sm:$0x4]  ;;  %v1083_v10 = vld [vmem:[#allocation2 + $0xe] ss:$32 sm:$0x10] }
 0x489   : > { %v1085_v13 = vld [vmem:[#allocation2 + $0xe] ss:$32 sm:$0x20]  ;;  %v1103_v16 = vld [vmem:[#allocation2 + $0xf] ss:$32 sm:$0x8] }
 0x48a   : > { %1048 = vrot.lane.b32.xlu1 %v1046_v4, %s1734_s18  ;;  %v1066_v11 = vor.u32 %v1065_v63, %v1064_v5  ;;  %v1084_v12 = vor.u32 %v1083_v10, %v1082_v6  ;;  %v1102_v14 = vor.u32 %v1101_v8, %v1100_v7  ;;  %v1087_v15 = vld [vmem:[#allocation2 + $0xe] ss:$32 sm:$0x40]  ;;  %v1121_v21 = vld [vmem:[#allocation2 + $0x10] ss:$32 sm:$0x2] }
 0x48b   : > { %v1089_v19 = vld [vmem:[#allocation2 + $0xe] ss:$32 sm:$0x80]  ;;  %v1105_v22 = vld [vmem:[#allocation2 + $0xf] ss:$32 sm:$0x10] }
 0x48c   : > { %v1068_v17 = vor.u32 %v1067_v9, %v1066_v11  ;;  %v1086_v18 = vor.u32 %v1085_v13, %v1084_v12  ;;  %v1104_v20 = vor.u32 %v1103_v16, %v1102_v14  ;;  %v1120_v23 = vld [vmem:[#allocation2 + $0x10] ss:$32 sm:$0x1]  ;;  %v1107_v26 = vld [vmem:[#allocation2 + $0xf] ss:$32 sm:$0x20] }
 0x48d   : > { %v1122_v27 = vor.u32 %v1121_v21, %v1120_v23  ;;  %v1109_v28 = vld [vmem:[#allocation2 + $0xf] ss:$32 sm:$0x40]  ;;  %v1123_v29 = vld [vmem:[#allocation2 + $0x10] ss:$32 sm:$0x4] }
 0x48e   : > { %1070 = vrot.lane.b32.xlu1 %v1068_v17, %s1736_s20  ;;  %v1088_v24 = vor.u32 %v1087_v15, %v1086_v18  ;;  %v1106_v25 = vor.u32 %v1105_v22, %v1104_v20  ;;  %v1111_v32 = vld [vmem:[#allocation2 + $0xf] ss:$32 sm:$0x80]  ;;  %v1125_v34 = vld [vmem:[#allocation2 + $0x10] ss:$32 sm:$0x8] }
 0x48f   : > { %v1124_v33 = vor.u32 %v1123_v29, %v1122_v27  ;;  %v774_v35 = vld [vmem:[#allocation2] ss:$32 sm:$0x2]  ;;  %v1127_v39 = vld [vmem:[#allocation2 + $0x10] ss:$32 sm:$0x10] }
 0x490   : > { %v1090_v30 = vor.u32 %v1089_v19, %v1088_v24  ;;  %v1108_v31 = vor.u32 %v1107_v26, %v1106_v25  ;;  %v773_v38 = vld [vmem:[#allocation2] ss:$32 sm:$0x1]  ;;  %v1129_v44 = vld [vmem:[#allocation2 + $0x10] ss:$32 sm:$0x20] }
 0x491   : > { %v1126_v37 = vor.u32 %v1125_v34, %v1124_v33  ;;  %v775_v40 = vor.u32 %v774_v35, %v773_v38  ;;  %v776_v43 = vld [vmem:[#allocation2] ss:$32 sm:$0x4]  ;;  %v1131_v45 = vld [vmem:[#allocation2 + $0x10] ss:$32 sm:$0x40] }
 0x492   : > { %1092 = vrot.lane.b32.xlu1 %v1090_v30, %s1738_s25  ;;  %v1110_v36 = vor.u32 %v1109_v28, %v1108_v31  ;;  %v778_v48 = vld [vmem:[#allocation2] ss:$32 sm:$0x8]  ;;  %v1133_v49 = vld [vmem:[#allocation2 + $0x10] ss:$32 sm:$0x80] }
 0x493   : > { %v1128_v42 = vor.u32 %v1127_v39, %v1126_v37  ;;  %v777_v46 = vor.u32 %v776_v43, %v775_v40  ;;  %v780_v52 = vld [vmem:[#allocation2] ss:$32 sm:$0x10]  ;;  %v1713_v37 = vld [vmem:[%s1795_s26 + $0x8] sm:$0xff]  ;;  %v1714_v40 = vld [vmem:[%s1795_s26 + $0x10] sm:$0xff] }
 0x494   : > { %v1112_v41 = vor.u32 %v1111_v32, %v1110_v36  ;;  %v782_v55 = vld [vmem:[#allocation2] ss:$32 sm:$0x20]  ;;  %v1715_v43 = vld [vmem:[%s1795_s26 + $0x18] sm:$0xff] }
 0x495   : > { %v1130_v47 = vor.u32 %v1129_v44, %v1128_v42  ;;  %v779_v50 = vor.u32 %v778_v48, %v777_v46  ;;  %v784_v56 = vld [vmem:[#allocation2] ss:$32 sm:$0x40] }
 0x496   : > { %1114 = vrot.lane.b32.xlu1 %v1112_v41, %s1739_s27  ;;  %v786_v58 = vld [vmem:[#allocation2] ss:$32 sm:$0x80] }
 0x497   : > { %v1132_v51 = vor.u32 %v1131_v45, %v1130_v47  ;;  %v781_v53 = vor.u32 %v780_v52, %v779_v50  ;;  %v1711_v32 = vld [vmem:[%s1951_s5] sm:$0xff]  }
 0x498   : > { %v1712_v34 = vld [vmem:[%s1795_s26] sm:$0xff] }
 0x499   : > { %v1134_v54 = vor.u32 %v1133_v49, %v1132_v51  ;;  %v783_v57 = vor.u32 %v782_v55, %v781_v53 }
 0x49b   : > { %1135 = vst.msk [vmem:[#allocation3 + $0x8] sm:$0xff] %vm448_vm4, %v1134_v54  ;;  %v785_v59 = vor.u32 %v784_v56, %v783_v57 }
 0x49d   : > { %v787_v60 = vor.u32 %v786_v58, %v785_v59 }
 0x49f   : > { %788 = vst.msk [vmem:[#allocation3] sm:$0xff] %vm448_vm4, %v787_v60 }
 0x4a3   : > { %v1238_v0 = vpop.permute.xlu0 %1237 }
 0x4a4   : > { %v1154_v61 = vpop.permute.xlu1 %1153 }
 0x4a5   : > { %1156 = vst.msk [vmem:[#allocation3 + $0x8] sm:$0xff] %vm809_vm5, %v1154_v61 }
 0x4a7   : > { %v1343_v6 = vpop.permute.xlu0 %1342 }
 0x4a8   : > { %v1175_v62 = vpop.permute.xlu1 %1174 }
 0x4a9   : > { %1177 = vst.msk [vmem:[#allocation3 + $0x8] sm:$0xff] %vm831_vm6, %v1175_v62 }
 0x4ab   : > { %v1364_v9 = vpop.permute.xlu0 %1363 }
 0x4ac   : > { %v1196_v63 = vpop.permute.xlu1 %1195 }
 0x4ad   : > { %1198 = vst.msk [vmem:[#allocation3 + $0x8] sm:$0xff] %vm853_vm7, %v1196_v63 }
 0x4b0   : > { %v1217_v1 = vpop.permute.xlu1 %1216 }
 0x4b1   : > { %1219 = vst.msk [vmem:[#allocation3 + $0x8] sm:$0xff] %vm875_vm8, %v1217_v1  ;;  %v1385_v11 = vpop.permute.xlu0 %1384 }
 0x4b2   : > { %1240 = vst.msk [vmem:[#allocation3 + $0x8] sm:$0xff] %vm897_vm9, %v1238_v0 }
 0x4b4   : > { %v1259_v2 = vpop.permute.xlu1 %1258 }
 0x4b5   : > { %1261 = vst.msk [vmem:[#allocation3 + $0x8] sm:$0xff] %vm919_vm10, %v1259_v2 }
 0x4b6   : > { %v1406_v14 = vpop.permute.xlu0 %1405 }
 0x4bb   : > { %v1280_v3 = vpop.permute.xlu1 %1279 }
 0x4bc   : > { %1282 = vst.msk [vmem:[#allocation3 + $0x8] sm:$0xff] %vm941_vm11, %v1280_v3 }
 0x4c0   : > { %v1427_v16 = vpop.permute.xlu0 %1426 }
 0x4c4   : > { %v807_v4 = vpop.permute.xlu1 %806 }
 0x4c5   : > { %810 = vst.msk [vmem:[#allocation3] sm:$0xff] %vm809_vm5, %v807_v4  ;;  %vm1465_vm5 = vcmask 1043456  }
 0x4c8   : > { %v1448_v19 = vpop.permute.xlu0 %1447 }
 0x4cc   : > { %v829_v5 = vpop.permute.xlu1 %828 }
 0x4cd   : > { %832 = vst.msk [vmem:[#allocation3] sm:$0xff] %vm831_vm6, %v829_v5 }
 0x4d0   : > { %v851_v7 = vpop.permute.xlu1 %850 }
 0x4d1   : > { %854 = vst.msk [vmem:[#allocation3] sm:$0xff] %vm853_vm7, %v851_v7 }
 0x4d4   : > { %v873_v8 = vpop.permute.xlu1 %872 }
 0x4d5   : > { %876 = vst.msk [vmem:[#allocation3] sm:$0xff] %vm875_vm8, %v873_v8 }
 0x4d8   : > { %v895_v10 = vpop.permute.xlu1 %894 }
 0x4d9   : > { %898 = vst.msk [vmem:[#allocation3] sm:$0xff] %vm897_vm9, %v895_v10 }
 0x4dc   : > { %v917_v12 = vpop.permute.xlu1 %916 }
 0x4dd   : > { %920 = vst.msk [vmem:[#allocation3] sm:$0xff] %vm919_vm10, %v917_v12 }
 0x4e0   : > { %v939_v13 = vpop.permute.xlu1 %938 }
 0x4e1   : > { %942 = vst.msk [vmem:[#allocation3] sm:$0xff] %vm941_vm11, %v939_v13 }
 0x4e4   : > { %v1301_v15 = vpop.permute.xlu1 %1300 }
 0x4e5   : > { %1303 = vst.msk [vmem:[#allocation3 + $0x8] sm:$0xff] %vm963_vm12, %v1301_v15 }
 0x4e8   : > { %v1322_v17 = vpop.permute.xlu1 %1321 }
 0x4e9   : > { %1324 = vst.msk [vmem:[#allocation3 + $0x8] sm:$0xff] %vm985_vm13, %v1322_v17 }
 0x4ea   : > { %1345 = vst.msk [vmem:[#allocation3 + $0x8] sm:$0xff] %vm1007_vm14, %v1343_v6 }
 0x4eb   : > { %1366 = vst.msk [vmem:[#allocation3 + $0x8] sm:$0xff] %vm1029_vm15, %v1364_v9 }
 0x4ec   : > { %v961_v18 = vpop.permute.xlu1 %960  ;;  %1387 = vst.msk [vmem:[#allocation3 + $0x8] sm:$0xff] %vm1051_vm0, %v1385_v11 }
 0x4ed   : > { %964 = vst.msk [vmem:[#allocation3] sm:$0xff] %vm963_vm12, %v961_v18 }
 0x4ee   : > { %1408 = vst.msk [vmem:[#allocation3 + $0x8] sm:$0xff] %vm1073_vm1, %v1406_v14 }
 0x4ef   : > { %1429 = vst.msk [vmem:[#allocation3 + $0x8] sm:$0xff] %vm1095_vm2, %v1427_v16 }
 0x4f0   : > { %1450 = vst.msk [vmem:[#allocation3 + $0x8] sm:$0xff] %vm1117_vm3, %v1448_v19  ;;  %v983_v20 = vpop.permute.xlu1 %982 }
 0x4f1   : > { %986 = vst.msk [vmem:[#allocation3] sm:$0xff] %vm985_vm13, %v983_v20 }
 0x4f4   : > { %v1005_v21 = vpop.permute.xlu1 %1004 }
 0x4f5   : > { %1008 = vst.msk [vmem:[#allocation3] sm:$0xff] %vm1007_vm14, %v1005_v21 }
 0x4f7   : > { %v1454_v22 = vld [vmem:[#allocation3 + $0x8] sm:$0xff] }
 0x4f8   : > { %v1456_v23 = vpack.c.bf16 %v1454_v22, %v1454_v22  ;;  %v1027_v24 = vpop.permute.xlu1 %1026 }
 0x4f9   : > { %1030 = vst.msk [vmem:[#allocation3] sm:$0xff] %vm1029_vm15, %v1027_v24 }
 0x4fa   : > { %1608 = vmatprep.subr.msk.bf16.mxu0 %vm1465_vm5, %v1456_v23 }
 0x4fc   : > { %v1049_v25 = vpop.permute.xlu1 %1048 }
 0x4fd   : > { %1052 = vst.msk [vmem:[#allocation3] sm:$0xff] %vm1051_vm0, %v1049_v25 }
 0x500   : > { %v1071_v26 = vpop.permute.xlu1 %1070 }
 0x501   : > { %1074 = vst.msk [vmem:[#allocation3] sm:$0xff] %vm1073_vm1, %v1071_v26 }
 0x504   : > { %v1093_v27 = vpop.permute.xlu1 %1092 }
 0x505   : > { %1096 = vst.msk [vmem:[#allocation3] sm:$0xff] %vm1095_vm2, %v1093_v27 }
 0x508   : > { %v1115_v28 = vpop.permute.xlu1 %1114 }
 0x509   : > { %1118 = vst.msk [vmem:[#allocation3] sm:$0xff] %vm1117_vm3, %v1115_v28 }
 0x510   : > { %v1453_v29 = vld [vmem:[#allocation3] sm:$0xff] }
 0x511   : > { %v1455_v30 = vpack.c.bf16 %v1453_v29, %v1453_v29 }
 0x513   : > { %v1467_v31 = vsel %vm1465_vm5, %v1455_v30, 0 }
 0x514   : > { %1487 = vmatpush1.bf16.msra.mxu0 %v1467_v31 }
 0x517   : > { %1609 = vmatmul.mubr.msk.bf16.vlgmr.msra.gmra.mxu0 %vm448_vm4, %v1711_v32 }
 0x5d7   : > { %v1506_v33 = vpop.f32.mrf.mxu0 }
 0x5d8   : > { %v1515_v35 = vadd.f32 %v1712_v34, %v1506_v33 }
 0x5d9   : > { %v1508_v36 = vpop.f32.mrf.mxu0 }
 0x5da   : > { %1519 = vst [vmem:[%s251_s10] sm:$0xff] %v1515_v35  ;;  %v1516_v38 = vadd.f32 %v1713_v37, %v1508_v36 }
 0x5db   : > { %v1510_v39 = vpop.f32.mrf.mxu0 }
 0x5dc   : > { %1520 = vst [vmem:[%s251_s10 + $0x8] sm:$0xff] %v1516_v38  ;;  %v1517_v41 = vadd.f32 %v1714_v40, %v1510_v39 }
 0x5dd   : > { %v1512_v42 = vpop.f32.mrf.mxu0 }
 0x5de   : > { %1521 = vst [vmem:[%s251_s10 + $0x10] sm:$0xff] %v1517_v41  ;;  %v1518_v44 = vadd.f32 %v1715_v43, %v1512_v42 }
 0x5e0   : > { %1522 = vst [vmem:[%s251_s10 + $0x18] sm:$0xff] %v1518_v44 }
 0x5e1 PF: > { %s16_s21 = sadd.s32 1, %s1722_s21  }
 0x5e2   : > { %p13_p4 = scmp.ge.s32.totalorder %s16_s21, 4  }
 0x5e4   :  { %15 = sbr.rel (!%p13_p4) target bundleno = 1 (0x1), region = 105 }

</bundles_post_ra>
